<compile_context>
chip_gen: v7x
topology: tpu7x:2x2x1
jax: 0.10.0
libtpu: 0.0.40
codegen_flags: <defaults>
</compile_context>

<pallas_src>
import functools

import jax
import jax.numpy as jnp
from jax import lax
from jax.experimental import pallas as pl
from jax.experimental.pallas import tpu as pltpu


def _round_up(x, m):
    return (x + m - 1) // m * m


def cbow_kernel(tok_ref,      # (Bp*S,) int32, SMEM (scalar prefetch)
                table_ref,    # (V, Ep)  f32, VMEM-resident embedding table (E padded)
                w_ref,        # (Ep, Lp) f32, VMEM-resident fc1.weight^T (padded)
                b_ref,        # (1, Lp)  f32, VMEM-resident fc1.bias (padded)
                out_ref,      # (BT, Lp) f32 output tile
                acc_ref,      # (BT, Ep) f32 scratch: bag-of-words accumulator
                *, seq_len):
    tile = pl.program_id(0)
    bt = acc_ref.shape[0]

    def gather_row(b, carry):
        base = (tile * bt + b) * seq_len
        # Static unroll over the (small, compile-time) sequence so the LLO
        # scheduler can interleave the dynamic row loads with the adds.
        row = table_ref[pl.ds(tok_ref[base], 1), :]
        for s in range(1, seq_len):
            row = row + table_ref[pl.ds(tok_ref[base + s], 1), :]
        acc_ref[pl.ds(b, 1), :] = row
        return carry

    if bt <= 32:
        # Fully static unroll for small batch tiles (best LLO visibility).
        for b in range(bt):
            gather_row(b, 0)
    else:
        # Large batch tiles: bounded code size, dynamic row index.
        lax.fori_loop(0, bt, gather_row, 0)

    # fc1 on the MXU: (BT, Ep) @ (Ep, Lp) + bias; lane-dense store (Lp % 128 == 0).
    out_ref[...] = (
        jnp.dot(acc_ref[...], w_ref[...], preferred_element_type=jnp.float32)
        + b_ref[...]
    )
    # TODO(synk): nn.Dropout in train mode would need pltpu.prng_* masking;
    # eval-mode dropout is the identity, which is what we emit here.


def cbow_forward(tokens, embed_table, fc1_weight, fc1_bias):
    """tokens: (B, S) int; embed_table: (V, E) f32; fc1_weight: (L, E); fc1_bias: (L,)."""
    B, S = tokens.shape
    V, E = embed_table.shape
    L = fc1_weight.shape[0]

    # Batch tile: fill the MXU M dim for large batches, avoid over-padding tiny
    # ones; always sublane (8) aligned.
    BT = min(128, _round_up(B, 8))
    Bp = _round_up(B, BT)            # padded batch (padded rows use token 0)
    Ep = _round_up(E, 128)           # lane-dense embedding rows / matmul K dim
    Lp = _round_up(L, 128)           # lane-dense output

    # Both the table and the fc1 weight stay resident in VMEM; guard the
    # footprint (v7x only has 64 MiB VMEM / 32 MiB scoped default).
    resident_bytes = (V * Ep + Ep * Lp) * 4
    assert resident_bytes <= 8 * 1024 * 1024, (
        "embedding table / fc1 weight too large to keep VMEM-resident")
    # TODO(synk): for very large V or L, tile V (gather over DMA) or Lp (second
    # grid axis) instead of keeping them resident.

    tok_p = jnp.zeros((Bp, S), jnp.int32).at[:B, :].set(tokens.astype(jnp.int32))
    tok_flat = tok_p.reshape(Bp * S)   # 1-D SMEM array: no [*,128] padding bloat

    tab_p = jnp.zeros((V, Ep), jnp.float32).at[:, :E].set(
        embed_table.astype(jnp.float32))
    w_p = jnp.zeros((Ep, Lp), jnp.float32).at[:E, :L].set(
        fc1_weight.T.astype(jnp.float32))
    b_p = jnp.zeros((1, Lp), jnp.float32).at[0, :L].set(
        fc1_bias.astype(jnp.float32))

    kernel = functools.partial(cbow_kernel, seq_len=S)

    out = pl.pallas_call(
        kernel,
        out_shape=jax.ShapeDtypeStruct((Bp, Lp), jnp.float32),
        grid_spec=pltpu.PrefetchScalarGridSpec(
            num_scalar_prefetch=1,                               # token ids -> SMEM
            grid=(Bp // BT,),
            in_specs=[
                pl.BlockSpec((V, Ep), lambda i, tok: (0, 0)),    # table (resident)
                pl.BlockSpec((Ep, Lp), lambda i, tok: (0, 0)),   # fc1 weight^T (resident)
                pl.BlockSpec((1, Lp), lambda i, tok: (0, 0)),    # fc1 bias (resident)
            ],
            out_specs=pl.BlockSpec((BT, Lp), lambda i, tok: (i, 0)),
            scratch_shapes=[
                pltpu.VMEM((BT, Ep), jnp.float32),               # bag-of-words acc
            ],
        ),
        compiler_params=pltpu.CompilerParams(
            dimension_semantics=("parallel",),                   # batch tiles -> megacore
            vmem_limit_bytes=64 * 1024 * 1024,
        ),
        cost_estimate=pl.CostEstimate(
            flops=2 * Bp * Ep * Lp + Bp * S * Ep,
            transcendentals=0,
            bytes_accessed=V * Ep * 4 + Ep * Lp * 4 + Bp * Lp * 4 + Bp * S * 4,
        ),
    )(tok_flat, tab_p, w_p, b_p)

    return out[:B, :L]


if __name__ == "__main__":
    # Small shapes consistent with the module; exercise the padding paths
    # (B=6 -> 8 rows, E=64 -> 128 lanes, L=5 -> 128 lanes).
    B, S = 6, 12          # batch of token sequences
    V, E, L = 512, 64, 5  # vocab_size, embed_size, label_size

    key = jax.random.PRNGKey(0)
    k_tok, k_emb, k_w, k_b = jax.random.split(key, 4)

    tokens = jax.random.randint(k_tok, (B, S), 0, V, dtype=jnp.int32)
    embed_table = jax.random.normal(k_emb, (V, E), dtype=jnp.float32) * 0.1
    fc1_weight = jax.random.normal(k_w, (L, E), dtype=jnp.float32) * 0.1
    fc1_bias = jax.random.normal(k_b, (L,), dtype=jnp.float32) * 0.1

    out = cbow_forward(tokens, embed_table, fc1_weight, fc1_bias)
    out = jax.block_until_ready(out)

    # Pure-JAX reference (embedding lookup -> sum over seq -> linear).
    ref = jnp.take(embed_table, tokens, axis=0).sum(axis=1) @ fc1_weight.T + fc1_bias
    assert out.shape == (B, L)
    assert jnp.allclose(out, ref, atol=1e-4, rtol=1e-4)

    print("KERNEL_OK")
</pallas_src>

<mosaic_0001>
module attributes {stable_mosaic.version = 11 : i64} {
  func.func @cbow_kernel(%arg0: i32, %arg1: memref<96xi32, #tpu.memory_space<smem>>, %arg2: memref<512x128xf32, #tpu.memory_space<vmem>>, %arg3: memref<128x128xf32, #tpu.memory_space<vmem>>, %arg4: memref<1x128xf32, #tpu.memory_space<vmem>>, %arg5: memref<8x128xf32, #tpu.memory_space<vmem>>, %arg6: memref<8x128xf32, #tpu.memory_space<vmem>>) attributes {dimension_semantics = [#tpu.dimension_semantics<parallel>], iteration_bounds = array<i64: 1>, scalar_prefetch = 1 : i64, scratch_operands = 1 : i64, tpu.core_type = #tpu.core_type<tc>, window_params = [{pipeline_mode = #tpu.pipeline_mode<synchronous>, transform_indices = @transform_0, window_bounds = array<i64: 512, 128>}, {pipeline_mode = #tpu.pipeline_mode<synchronous>, transform_indices = @transform_1, window_bounds = array<i64: 128, 128>}, {pipeline_mode = #tpu.pipeline_mode<synchronous>, transform_indices = @transform_2, window_bounds = array<i64: 1, 128>}, {transform_indices = @transform_3, window_bounds = array<i64: 8, 128>}]} {
    %c8_i32 = arith.constant 8 : i32
    %0 = arith.muli %arg0, %c8_i32 : i32
    %c0_i32 = arith.constant 0 : i32
    %1 = arith.addi %0, %c0_i32 : i32
    %c12_i32 = arith.constant 12 : i32
    %2 = arith.muli %1, %c12_i32 : i32
    %3 = arith.index_cast %2 : i32 to index
    %4 = memref.load %arg1[%3] : memref<96xi32, #tpu.memory_space<smem>>
    %5 = arith.index_cast %4 : i32 to index
    %c0 = arith.constant 0 : index
    %6 = vector.load %arg2[%5, %c0] : memref<512x128xf32, #tpu.memory_space<vmem>>, vector<1x128xf32>
    %c1_i32 = arith.constant 1 : i32
    %7 = arith.addi %2, %c1_i32 : i32
    %8 = arith.index_cast %7 : i32 to index
    %9 = memref.load %arg1[%8] : memref<96xi32, #tpu.memory_space<smem>>
    %10 = arith.index_cast %9 : i32 to index
    %c0_0 = arith.constant 0 : index
    %11 = vector.load %arg2[%10, %c0_0] : memref<512x128xf32, #tpu.memory_space<vmem>>, vector<1x128xf32>
    %12 = arith.addf %6, %11 : vector<1x128xf32>
    %c2_i32 = arith.constant 2 : i32
    %13 = arith.addi %2, %c2_i32 : i32
    %14 = arith.index_cast %13 : i32 to index
    %15 = memref.load %arg1[%14] : memref<96xi32, #tpu.memory_space<smem>>
    %16 = arith.index_cast %15 : i32 to index
    %c0_1 = arith.constant 0 : index
    %17 = vector.load %arg2[%16, %c0_1] : memref<512x128xf32, #tpu.memory_space<vmem>>, vector<1x128xf32>
    %18 = arith.addf %12, %17 : vector<1x128xf32>
    %c3_i32 = arith.constant 3 : i32
    %19 = arith.addi %2, %c3_i32 : i32
    %20 = arith.index_cast %19 : i32 to index
    %21 = memref.load %arg1[%20] : memref<96xi32, #tpu.memory_space<smem>>
    %22 = arith.index_cast %21 : i32 to index
    %c0_2 = arith.constant 0 : index
    %23 = vector.load %arg2[%22, %c0_2] : memref<512x128xf32, #tpu.memory_space<vmem>>, vector<1x128xf32>
    %24 = arith.addf %18, %23 : vector<1x128xf32>
    %c4_i32 = arith.constant 4 : i32
    %25 = arith.addi %2, %c4_i32 : i32
    %26 = arith.index_cast %25 : i32 to index
    %27 = memref.load %arg1[%26] : memref<96xi32, #tpu.memory_space<smem>>
    %28 = arith.index_cast %27 : i32 to index
    %c0_3 = arith.constant 0 : index
    %29 = vector.load %arg2[%28, %c0_3] : memref<512x128xf32, #tpu.memory_space<vmem>>, vector<1x128xf32>
    %30 = arith.addf %24, %29 : vector<1x128xf32>
    %c5_i32 = arith.constant 5 : i32
    %31 = arith.addi %2, %c5_i32 : i32
    %32 = arith.index_cast %31 : i32 to index
    %33 = memref.load %arg1[%32] : memref<96xi32, #tpu.memory_space<smem>>
    %34 = arith.index_cast %33 : i32 to index
    %c0_4 = arith.constant 0 : index
    %35 = vector.load %arg2[%34, %c0_4] : memref<512x128xf32, #tpu.memory_space<vmem>>, vector<1x128xf32>
    %36 = arith.addf %30, %35 : vector<1x128xf32>
    %c6_i32 = arith.constant 6 : i32
    %37 = arith.addi %2, %c6_i32 : i32
    %38 = arith.index_cast %37 : i32 to index
    %39 = memref.load %arg1[%38] : memref<96xi32, #tpu.memory_space<smem>>
    %40 = arith.index_cast %39 : i32 to index
    %c0_5 = arith.constant 0 : index
    %41 = vector.load %arg2[%40, %c0_5] : memref<512x128xf32, #tpu.memory_space<vmem>>, vector<1x128xf32>
    %42 = arith.addf %36, %41 : vector<1x128xf32>
    %c7_i32 = arith.constant 7 : i32
    %43 = arith.addi %2, %c7_i32 : i32
    %44 = arith.index_cast %43 : i32 to index
    %45 = memref.load %arg1[%44] : memref<96xi32, #tpu.memory_space<smem>>
    %46 = arith.index_cast %45 : i32 to index
    %c0_6 = arith.constant 0 : index
    %47 = vector.load %arg2[%46, %c0_6] : memref<512x128xf32, #tpu.memory_space<vmem>>, vector<1x128xf32>
    %48 = arith.addf %42, %47 : vector<1x128xf32>
    %c8_i32_7 = arith.constant 8 : i32
    %49 = arith.addi %2, %c8_i32_7 : i32
    %50 = arith.index_cast %49 : i32 to index
    %51 = memref.load %arg1[%50] : memref<96xi32, #tpu.memory_space<smem>>
    %52 = arith.index_cast %51 : i32 to index
    %c0_8 = arith.constant 0 : index
    %53 = vector.load %arg2[%52, %c0_8] : memref<512x128xf32, #tpu.memory_space<vmem>>, vector<1x128xf32>
    %54 = arith.addf %48, %53 : vector<1x128xf32>
    %c9_i32 = arith.constant 9 : i32
    %55 = arith.addi %2, %c9_i32 : i32
    %56 = arith.index_cast %55 : i32 to index
    %57 = memref.load %arg1[%56] : memref<96xi32, #tpu.memory_space<smem>>
    %58 = arith.index_cast %57 : i32 to index
    %c0_9 = arith.constant 0 : index
    %59 = vector.load %arg2[%58, %c0_9] : memref<512x128xf32, #tpu.memory_space<vmem>>, vector<1x128xf32>
    %60 = arith.addf %54, %59 : vector<1x128xf32>
    %c10_i32 = arith.constant 10 : i32
    %61 = arith.addi %2, %c10_i32 : i32
    %62 = arith.index_cast %61 : i32 to index
    %63 = memref.load %arg1[%62] : memref<96xi32, #tpu.memory_space<smem>>
    %64 = arith.index_cast %63 : i32 to index
    %c0_10 = arith.constant 0 : index
    %65 = vector.load %arg2[%64, %c0_10] : memref<512x128xf32, #tpu.memory_space<vmem>>, vector<1x128xf32>
    %66 = arith.addf %60, %65 : vector<1x128xf32>
    %c11_i32 = arith.constant 11 : i32
    %67 = arith.addi %2, %c11_i32 : i32
    %68 = arith.index_cast %67 : i32 to index
    %69 = memref.load %arg1[%68] : memref<96xi32, #tpu.memory_space<smem>>
    %70 = arith.index_cast %69 : i32 to index
    %c0_11 = arith.constant 0 : index
    %71 = vector.load %arg2[%70, %c0_11] : memref<512x128xf32, #tpu.memory_space<vmem>>, vector<1x128xf32>
    %72 = arith.addf %66, %71 : vector<1x128xf32>
    %c0_12 = arith.constant 0 : index
    %c0_13 = arith.constant 0 : index
    %73 = vector.load %arg6[%c0_12, %c0_13] : memref<8x128xf32, #tpu.memory_space<vmem>>, vector<1x128xf32>
    tpu.vector_store %arg6[%c0_12, %c0_13], %72 {strides = array<i32>} : memref<8x128xf32, #tpu.memory_space<vmem>>, vector<1x128xf32>,
    %c8_i32_14 = arith.constant 8 : i32
    %74 = arith.muli %arg0, %c8_i32_14 : i32
    %c1_i32_15 = arith.constant 1 : i32
    %75 = arith.addi %74, %c1_i32_15 : i32
    %c12_i32_16 = arith.constant 12 : i32
    %76 = arith.muli %75, %c12_i32_16 : i32
    %77 = arith.index_cast %76 : i32 to index
    %78 = memref.load %arg1[%77] : memref<96xi32, #tpu.memory_space<smem>>
    %79 = arith.index_cast %78 : i32 to index
    %c0_17 = arith.constant 0 : index
    %80 = vector.load %arg2[%79, %c0_17] : memref<512x128xf32, #tpu.memory_space<vmem>>, vector<1x128xf32>
    %c1_i32_18 = arith.constant 1 : i32
    %81 = arith.addi %76, %c1_i32_18 : i32
    %82 = arith.index_cast %81 : i32 to index
    %83 = memref.load %arg1[%82] : memref<96xi32, #tpu.memory_space<smem>>
    %84 = arith.index_cast %83 : i32 to index
    %c0_19 = arith.constant 0 : index
    %85 = vector.load %arg2[%84, %c0_19] : memref<512x128xf32, #tpu.memory_space<vmem>>, vector<1x128xf32>
    %86 = arith.addf %80, %85 : vector<1x128xf32>
    %c2_i32_20 = arith.constant 2 : i32
    %87 = arith.addi %76, %c2_i32_20 : i32
    %88 = arith.index_cast %87 : i32 to index
    %89 = memref.load %arg1[%88] : memref<96xi32, #tpu.memory_space<smem>>
    %90 = arith.index_cast %89 : i32 to index
    %c0_21 = arith.constant 0 : index
    %91 = vector.load %arg2[%90, %c0_21] : memref<512x128xf32, #tpu.memory_space<vmem>>, vector<1x128xf32>
    %92 = arith.addf %86, %91 : vector<1x128xf32>
    %c3_i32_22 = arith.constant 3 : i32
    %93 = arith.addi %76, %c3_i32_22 : i32
    %94 = arith.index_cast %93 : i32 to index
    %95 = memref.load %arg1[%94] : memref<96xi32, #tpu.memory_space<smem>>
    %96 = arith.index_cast %95 : i32 to index
    %c0_23 = arith.constant 0 : index
    %97 = vector.load %arg2[%96, %c0_23] : memref<512x128xf32, #tpu.memory_space<vmem>>, vector<1x128xf32>
    %98 = arith.addf %92, %97 : vector<1x128xf32>
    %c4_i32_24 = arith.constant 4 : i32
    %99 = arith.addi %76, %c4_i32_24 : i32
    %100 = arith.index_cast %99 : i32 to index
    %101 = memref.load %arg1[%100] : memref<96xi32, #tpu.memory_space<smem>>
    %102 = arith.index_cast %101 : i32 to index
    %c0_25 = arith.constant 0 : index
    %103 = vector.load %arg2[%102, %c0_25] : memref<512x128xf32, #tpu.memory_space<vmem>>, vector<1x128xf32>
    %104 = arith.addf %98, %103 : vector<1x128xf32>
    %c5_i32_26 = arith.constant 5 : i32
    %105 = arith.addi %76, %c5_i32_26 : i32
    %106 = arith.index_cast %105 : i32 to index
    %107 = memref.load %arg1[%106] : memref<96xi32, #tpu.memory_space<smem>>
    %108 = arith.index_cast %107 : i32 to index
    %c0_27 = arith.constant 0 : index
    %109 = vector.load %arg2[%108, %c0_27] : memref<512x128xf32, #tpu.memory_space<vmem>>, vector<1x128xf32>
    %110 = arith.addf %104, %109 : vector<1x128xf32>
    %c6_i32_28 = arith.constant 6 : i32
    %111 = arith.addi %76, %c6_i32_28 : i32
    %112 = arith.index_cast %111 : i32 to index
    %113 = memref.load %arg1[%112] : memref<96xi32, #tpu.memory_space<smem>>
    %114 = arith.index_cast %113 : i32 to index
    %c0_29 = arith.constant 0 : index
    %115 = vector.load %arg2[%114, %c0_29] : memref<512x128xf32, #tpu.memory_space<vmem>>, vector<1x128xf32>
    %116 = arith.addf %110, %115 : vector<1x128xf32>
    %c7_i32_30 = arith.constant 7 : i32
    %117 = arith.addi %76, %c7_i32_30 : i32
    %118 = arith.index_cast %117 : i32 to index
    %119 = memref.load %arg1[%118] : memref<96xi32, #tpu.memory_space<smem>>
    %120 = arith.index_cast %119 : i32 to index
    %c0_31 = arith.constant 0 : index
    %121 = vector.load %arg2[%120, %c0_31] : memref<512x128xf32, #tpu.memory_space<vmem>>, vector<1x128xf32>
    %122 = arith.addf %116, %121 : vector<1x128xf32>
    %c8_i32_32 = arith.constant 8 : i32
    %123 = arith.addi %76, %c8_i32_32 : i32
    %124 = arith.index_cast %123 : i32 to index
    %125 = memref.load %arg1[%124] : memref<96xi32, #tpu.memory_space<smem>>
    %126 = arith.index_cast %125 : i32 to index
    %c0_33 = arith.constant 0 : index
    %127 = vector.load %arg2[%126, %c0_33] : memref<512x128xf32, #tpu.memory_space<vmem>>, vector<1x128xf32>
    %128 = arith.addf %122, %127 : vector<1x128xf32>
    %c9_i32_34 = arith.constant 9 : i32
    %129 = arith.addi %76, %c9_i32_34 : i32
    %130 = arith.index_cast %129 : i32 to index
    %131 = memref.load %arg1[%130] : memref<96xi32, #tpu.memory_space<smem>>
    %132 = arith.index_cast %131 : i32 to index
    %c0_35 = arith.constant 0 : index
    %133 = vector.load %arg2[%132, %c0_35] : memref<512x128xf32, #tpu.memory_space<vmem>>, vector<1x128xf32>
    %134 = arith.addf %128, %133 : vector<1x128xf32>
    %c10_i32_36 = arith.constant 10 : i32
    %135 = arith.addi %76, %c10_i32_36 : i32
    %136 = arith.index_cast %135 : i32 to index
    %137 = memref.load %arg1[%136] : memref<96xi32, #tpu.memory_space<smem>>
    %138 = arith.index_cast %137 : i32 to index
    %c0_37 = arith.constant 0 : index
    %139 = vector.load %arg2[%138, %c0_37] : memref<512x128xf32, #tpu.memory_space<vmem>>, vector<1x128xf32>
    %140 = arith.addf %134, %139 : vector<1x128xf32>
    %c11_i32_38 = arith.constant 11 : i32
    %141 = arith.addi %76, %c11_i32_38 : i32
    %142 = arith.index_cast %141 : i32 to index
    %143 = memref.load %arg1[%142] : memref<96xi32, #tpu.memory_space<smem>>
    %144 = arith.index_cast %143 : i32 to index
    %c0_39 = arith.constant 0 : index
    %145 = vector.load %arg2[%144, %c0_39] : memref<512x128xf32, #tpu.memory_space<vmem>>, vector<1x128xf32>
    %146 = arith.addf %140, %145 : vector<1x128xf32>
    %c1 = arith.constant 1 : index
    %c0_40 = arith.constant 0 : index
    %147 = vector.load %arg6[%c1, %c0_40] : memref<8x128xf32, #tpu.memory_space<vmem>>, vector<1x128xf32>
    tpu.vector_store %arg6[%c1, %c0_40], %146 {strides = array<i32>} : memref<8x128xf32, #tpu.memory_space<vmem>>, vector<1x128xf32>,
    %c8_i32_41 = arith.constant 8 : i32
    %148 = arith.muli %arg0, %c8_i32_41 : i32
    %c2_i32_42 = arith.constant 2 : i32
    %149 = arith.addi %148, %c2_i32_42 : i32
    %c12_i32_43 = arith.constant 12 : i32
    %150 = arith.muli %149, %c12_i32_43 : i32
    %151 = arith.index_cast %150 : i32 to index
    %152 = memref.load %arg1[%151] : memref<96xi32, #tpu.memory_space<smem>>
    %153 = arith.index_cast %152 : i32 to index
    %c0_44 = arith.constant 0 : index
    %154 = vector.load %arg2[%153, %c0_44] : memref<512x128xf32, #tpu.memory_space<vmem>>, vector<1x128xf32>
    %c1_i32_45 = arith.constant 1 : i32
    %155 = arith.addi %150, %c1_i32_45 : i32
    %156 = arith.index_cast %155 : i32 to index
    %157 = memref.load %arg1[%156] : memref<96xi32, #tpu.memory_space<smem>>
    %158 = arith.index_cast %157 : i32 to index
    %c0_46 = arith.constant 0 : index
    %159 = vector.load %arg2[%158, %c0_46] : memref<512x128xf32, #tpu.memory_space<vmem>>, vector<1x128xf32>
    %160 = arith.addf %154, %159 : vector<1x128xf32>
    %c2_i32_47 = arith.constant 2 : i32
    %161 = arith.addi %150, %c2_i32_47 : i32
    %162 = arith.index_cast %161 : i32 to index
    %163 = memref.load %arg1[%162] : memref<96xi32, #tpu.memory_space<smem>>
    %164 = arith.index_cast %163 : i32 to index
    %c0_48 = arith.constant 0 : index
    %165 = vector.load %arg2[%164, %c0_48] : memref<512x128xf32, #tpu.memory_space<vmem>>, vector<1x128xf32>
    %166 = arith.addf %160, %165 : vector<1x128xf32>
    %c3_i32_49 = arith.constant 3 : i32
    %167 = arith.addi %150, %c3_i32_49 : i32
    %168 = arith.index_cast %167 : i32 to index
    %169 = memref.load %arg1[%168] : memref<96xi32, #tpu.memory_space<smem>>
    %170 = arith.index_cast %169 : i32 to index
    %c0_50 = arith.constant 0 : index
    %171 = vector.load %arg2[%170, %c0_50] : memref<512x128xf32, #tpu.memory_space<vmem>>, vector<1x128xf32>
    %172 = arith.addf %166, %171 : vector<1x128xf32>
    %c4_i32_51 = arith.constant 4 : i32
    %173 = arith.addi %150, %c4_i32_51 : i32
    %174 = arith.index_cast %173 : i32 to index
    %175 = memref.load %arg1[%174] : memref<96xi32, #tpu.memory_space<smem>>
    %176 = arith.index_cast %175 : i32 to index
    %c0_52 = arith.constant 0 : index
    %177 = vector.load %arg2[%176, %c0_52] : memref<512x128xf32, #tpu.memory_space<vmem>>, vector<1x128xf32>
    %178 = arith.addf %172, %177 : vector<1x128xf32>
    %c5_i32_53 = arith.constant 5 : i32
    %179 = arith.addi %150, %c5_i32_53 : i32
    %180 = arith.index_cast %179 : i32 to index
    %181 = memref.load %arg1[%180] : memref<96xi32, #tpu.memory_space<smem>>
    %182 = arith.index_cast %181 : i32 to index
    %c0_54 = arith.constant 0 : index
    %183 = vector.load %arg2[%182, %c0_54] : memref<512x128xf32, #tpu.memory_space<vmem>>, vector<1x128xf32>
    %184 = arith.addf %178, %183 : vector<1x128xf32>
    %c6_i32_55 = arith.constant 6 : i32
    %185 = arith.addi %150, %c6_i32_55 : i32
    %186 = arith.index_cast %185 : i32 to index
    %187 = memref.load %arg1[%186] : memref<96xi32, #tpu.memory_space<smem>>
    %188 = arith.index_cast %187 : i32 to index
    %c0_56 = arith.constant 0 : index
    %189 = vector.load %arg2[%188, %c0_56] : memref<512x128xf32, #tpu.memory_space<vmem>>, vector<1x128xf32>
    %190 = arith.addf %184, %189 : vector<1x128xf32>
    %c7_i32_57 = arith.constant 7 : i32
    %191 = arith.addi %150, %c7_i32_57 : i32
    %192 = arith.index_cast %191 : i32 to index
    %193 = memref.load %arg1[%192] : memref<96xi32, #tpu.memory_space<smem>>
    %194 = arith.index_cast %193 : i32 to index
    %c0_58 = arith.constant 0 : index
    %195 = vector.load %arg2[%194, %c0_58] : memref<512x128xf32, #tpu.memory_space<vmem>>, vector<1x128xf32>
    %196 = arith.addf %190, %195 : vector<1x128xf32>
    %c8_i32_59 = arith.constant 8 : i32
    %197 = arith.addi %150, %c8_i32_59 : i32
    %198 = arith.index_cast %197 : i32 to index
    %199 = memref.load %arg1[%198] : memref<96xi32, #tpu.memory_space<smem>>
    %200 = arith.index_cast %199 : i32 to index
    %c0_60 = arith.constant 0 : index
    %201 = vector.load %arg2[%200, %c0_60] : memref<512x128xf32, #tpu.memory_space<vmem>>, vector<1x128xf32>
    %202 = arith.addf %196, %201 : vector<1x128xf32>
    %c9_i32_61 = arith.constant 9 : i32
    %203 = arith.addi %150, %c9_i32_61 : i32
    %204 = arith.index_cast %203 : i32 to index
    %205 = memref.load %arg1[%204] : memref<96xi32, #tpu.memory_space<smem>>
    %206 = arith.index_cast %205 : i32 to index
    %c0_62 = arith.constant 0 : index
    %207 = vector.load %arg2[%206, %c0_62] : memref<512x128xf32, #tpu.memory_space<vmem>>, vector<1x128xf32>
    %208 = arith.addf %202, %207 : vector<1x128xf32>
    %c10_i32_63 = arith.constant 10 : i32
    %209 = arith.addi %150, %c10_i32_63 : i32
    %210 = arith.index_cast %209 : i32 to index
    %211 = memref.load %arg1[%210] : memref<96xi32, #tpu.memory_space<smem>>
    %212 = arith.index_cast %211 : i32 to index
    %c0_64 = arith.constant 0 : index
    %213 = vector.load %arg2[%212, %c0_64] : memref<512x128xf32, #tpu.memory_space<vmem>>, vector<1x128xf32>
    %214 = arith.addf %208, %213 : vector<1x128xf32>
    %c11_i32_65 = arith.constant 11 : i32
    %215 = arith.addi %150, %c11_i32_65 : i32
    %216 = arith.index_cast %215 : i32 to index
    %217 = memref.load %arg1[%216] : memref<96xi32, #tpu.memory_space<smem>>
    %218 = arith.index_cast %217 : i32 to index
    %c0_66 = arith.constant 0 : index
    %219 = vector.load %arg2[%218, %c0_66] : memref<512x128xf32, #tpu.memory_space<vmem>>, vector<1x128xf32>
    %220 = arith.addf %214, %219 : vector<1x128xf32>
    %c2 = arith.constant 2 : index
    %c0_67 = arith.constant 0 : index
    %221 = vector.load %arg6[%c2, %c0_67] : memref<8x128xf32, #tpu.memory_space<vmem>>, vector<1x128xf32>
    tpu.vector_store %arg6[%c2, %c0_67], %220 {strides = array<i32>} : memref<8x128xf32, #tpu.memory_space<vmem>>, vector<1x128xf32>,
    %c8_i32_68 = arith.constant 8 : i32
    %222 = arith.muli %arg0, %c8_i32_68 : i32
    %c3_i32_69 = arith.constant 3 : i32
    %223 = arith.addi %222, %c3_i32_69 : i32
    %c12_i32_70 = arith.constant 12 : i32
    %224 = arith.muli %223, %c12_i32_70 : i32
    %225 = arith.index_cast %224 : i32 to index
    %226 = memref.load %arg1[%225] : memref<96xi32, #tpu.memory_space<smem>>
    %227 = arith.index_cast %226 : i32 to index
    %c0_71 = arith.constant 0 : index
    %228 = vector.load %arg2[%227, %c0_71] : memref<512x128xf32, #tpu.memory_space<vmem>>, vector<1x128xf32>
    %c1_i32_72 = arith.constant 1 : i32
    %229 = arith.addi %224, %c1_i32_72 : i32
    %230 = arith.index_cast %229 : i32 to index
    %231 = memref.load %arg1[%230] : memref<96xi32, #tpu.memory_space<smem>>
    %232 = arith.index_cast %231 : i32 to index
    %c0_73 = arith.constant 0 : index
    %233 = vector.load %arg2[%232, %c0_73] : memref<512x128xf32, #tpu.memory_space<vmem>>, vector<1x128xf32>
    %234 = arith.addf %228, %233 : vector<1x128xf32>
    %c2_i32_74 = arith.constant 2 : i32
    %235 = arith.addi %224, %c2_i32_74 : i32
    %236 = arith.index_cast %235 : i32 to index
    %237 = memref.load %arg1[%236] : memref<96xi32, #tpu.memory_space<smem>>
    %238 = arith.index_cast %237 : i32 to index
    %c0_75 = arith.constant 0 : index
    %239 = vector.load %arg2[%238, %c0_75] : memref<512x128xf32, #tpu.memory_space<vmem>>, vector<1x128xf32>
    %240 = arith.addf %234, %239 : vector<1x128xf32>
    %c3_i32_76 = arith.constant 3 : i32
    %241 = arith.addi %224, %c3_i32_76 : i32
    %242 = arith.index_cast %241 : i32 to index
    %243 = memref.load %arg1[%242] : memref<96xi32, #tpu.memory_space<smem>>
    %244 = arith.index_cast %243 : i32 to index
    %c0_77 = arith.constant 0 : index
    %245 = vector.load %arg2[%244, %c0_77] : memref<512x128xf32, #tpu.memory_space<vmem>>, vector<1x128xf32>
    %246 = arith.addf %240, %245 : vector<1x128xf32>
    %c4_i32_78 = arith.constant 4 : i32
    %247 = arith.addi %224, %c4_i32_78 : i32
    %248 = arith.index_cast %247 : i32 to index
    %249 = memref.load %arg1[%248] : memref<96xi32, #tpu.memory_space<smem>>
    %250 = arith.index_cast %249 : i32 to index
    %c0_79 = arith.constant 0 : index
    %251 = vector.load %arg2[%250, %c0_79] : memref<512x128xf32, #tpu.memory_space<vmem>>, vector<1x128xf32>
    %252 = arith.addf %246, %251 : vector<1x128xf32>
    %c5_i32_80 = arith.constant 5 : i32
    %253 = arith.addi %224, %c5_i32_80 : i32
    %254 = arith.index_cast %253 : i32 to index
    %255 = memref.load %arg1[%254] : memref<96xi32, #tpu.memory_space<smem>>
    %256 = arith.index_cast %255 : i32 to index
    %c0_81 = arith.constant 0 : index
    %257 = vector.load %arg2[%256, %c0_81] : memref<512x128xf32, #tpu.memory_space<vmem>>, vector<1x128xf32>
    %258 = arith.addf %252, %257 : vector<1x128xf32>
    %c6_i32_82 = arith.constant 6 : i32
    %259 = arith.addi %224, %c6_i32_82 : i32
    %260 = arith.index_cast %259 : i32 to index
    %261 = memref.load %arg1[%260] : memref<96xi32, #tpu.memory_space<smem>>
    %262 = arith.index_cast %261 : i32 to index
    %c0_83 = arith.constant 0 : index
    %263 = vector.load %arg2[%262, %c0_83] : memref<512x128xf32, #tpu.memory_space<vmem>>, vector<1x128xf32>
    %264 = arith.addf %258, %263 : vector<1x128xf32>
    %c7_i32_84 = arith.constant 7 : i32
    %265 = arith.addi %224, %c7_i32_84 : i32
    %266 = arith.index_cast %265 : i32 to index
    %267 = memref.load %arg1[%266] : memref<96xi32, #tpu.memory_space<smem>>
    %268 = arith.index_cast %267 : i32 to index
    %c0_85 = arith.constant 0 : index
    %269 = vector.load %arg2[%268, %c0_85] : memref<512x128xf32, #tpu.memory_space<vmem>>, vector<1x128xf32>
    %270 = arith.addf %264, %269 : vector<1x128xf32>
    %c8_i32_86 = arith.constant 8 : i32
    %271 = arith.addi %224, %c8_i32_86 : i32
    %272 = arith.index_cast %271 : i32 to index
    %273 = memref.load %arg1[%272] : memref<96xi32, #tpu.memory_space<smem>>
    %274 = arith.index_cast %273 : i32 to index
    %c0_87 = arith.constant 0 : index
    %275 = vector.load %arg2[%274, %c0_87] : memref<512x128xf32, #tpu.memory_space<vmem>>, vector<1x128xf32>
    %276 = arith.addf %270, %275 : vector<1x128xf32>
    %c9_i32_88 = arith.constant 9 : i32
    %277 = arith.addi %224, %c9_i32_88 : i32
    %278 = arith.index_cast %277 : i32 to index
    %279 = memref.load %arg1[%278] : memref<96xi32, #tpu.memory_space<smem>>
    %280 = arith.index_cast %279 : i32 to index
    %c0_89 = arith.constant 0 : index
    %281 = vector.load %arg2[%280, %c0_89] : memref<512x128xf32, #tpu.memory_space<vmem>>, vector<1x128xf32>
    %282 = arith.addf %276, %281 : vector<1x128xf32>
    %c10_i32_90 = arith.constant 10 : i32
    %283 = arith.addi %224, %c10_i32_90 : i32
    %284 = arith.index_cast %283 : i32 to index
    %285 = memref.load %arg1[%284] : memref<96xi32, #tpu.memory_space<smem>>
    %286 = arith.index_cast %285 : i32 to index
    %c0_91 = arith.constant 0 : index
    %287 = vector.load %arg2[%286, %c0_91] : memref<512x128xf32, #tpu.memory_space<vmem>>, vector<1x128xf32>
    %288 = arith.addf %282, %287 : vector<1x128xf32>
    %c11_i32_92 = arith.constant 11 : i32
    %289 = arith.addi %224, %c11_i32_92 : i32
    %290 = arith.index_cast %289 : i32 to index
    %291 = memref.load %arg1[%290] : memref<96xi32, #tpu.memory_space<smem>>
    %292 = arith.index_cast %291 : i32 to index
    %c0_93 = arith.constant 0 : index
    %293 = vector.load %arg2[%292, %c0_93] : memref<512x128xf32, #tpu.memory_space<vmem>>, vector<1x128xf32>
    %294 = arith.addf %288, %293 : vector<1x128xf32>
    %c3 = arith.constant 3 : index
    %c0_94 = arith.constant 0 : index
    %295 = vector.load %arg6[%c3, %c0_94] : memref<8x128xf32, #tpu.memory_space<vmem>>, vector<1x128xf32>
    tpu.vector_store %arg6[%c3, %c0_94], %294 {strides = array<i32>} : memref<8x128xf32, #tpu.memory_space<vmem>>, vector<1x128xf32>,
    %c8_i32_95 = arith.constant 8 : i32
    %296 = arith.muli %arg0, %c8_i32_95 : i32
    %c4_i32_96 = arith.constant 4 : i32
    %297 = arith.addi %296, %c4_i32_96 : i32
    %c12_i32_97 = arith.constant 12 : i32
    %298 = arith.muli %297, %c12_i32_97 : i32
    %299 = arith.index_cast %298 : i32 to index
    %300 = memref.load %arg1[%299] : memref<96xi32, #tpu.memory_space<smem>>
    %301 = arith.index_cast %300 : i32 to index
    %c0_98 = arith.constant 0 : index
    %302 = vector.load %arg2[%301, %c0_98] : memref<512x128xf32, #tpu.memory_space<vmem>>, vector<1x128xf32>
    %c1_i32_99 = arith.constant 1 : i32
    %303 = arith.addi %298, %c1_i32_99 : i32
    %304 = arith.index_cast %303 : i32 to index
    %305 = memref.load %arg1[%304] : memref<96xi32, #tpu.memory_space<smem>>
    %306 = arith.index_cast %305 : i32 to index
    %c0_100 = arith.constant 0 : index
    %307 = vector.load %arg2[%306, %c0_100] : memref<512x128xf32, #tpu.memory_space<vmem>>, vector<1x128xf32>
    %308 = arith.addf %302, %307 : vector<1x128xf32>
    %c2_i32_101 = arith.constant 2 : i32
    %309 = arith.addi %298, %c2_i32_101 : i32
    %310 = arith.index_cast %309 : i32 to index
    %311 = memref.load %arg1[%310] : memref<96xi32, #tpu.memory_space<smem>>
    %312 = arith.index_cast %311 : i32 to index
    %c0_102 = arith.constant 0 : index
    %313 = vector.load %arg2[%312, %c0_102] : memref<512x128xf32, #tpu.memory_space<vmem>>, vector<1x128xf32>
    %314 = arith.addf %308, %313 : vector<1x128xf32>
    %c3_i32_103 = arith.constant 3 : i32
    %315 = arith.addi %298, %c3_i32_103 : i32
    %316 = arith.index_cast %315 : i32 to index
    %317 = memref.load %arg1[%316] : memref<96xi32, #tpu.memory_space<smem>>
    %318 = arith.index_cast %317 : i32 to index
    %c0_104 = arith.constant 0 : index
    %319 = vector.load %arg2[%318, %c0_104] : memref<512x128xf32, #tpu.memory_space<vmem>>, vector<1x128xf32>
    %320 = arith.addf %314, %319 : vector<1x128xf32>
    %c4_i32_105 = arith.constant 4 : i32
    %321 = arith.addi %298, %c4_i32_105 : i32
    %322 = arith.index_cast %321 : i32 to index
    %323 = memref.load %arg1[%322] : memref<96xi32, #tpu.memory_space<smem>>
    %324 = arith.index_cast %323 : i32 to index
    %c0_106 = arith.constant 0 : index
    %325 = vector.load %arg2[%324, %c0_106] : memref<512x128xf32, #tpu.memory_space<vmem>>, vector<1x128xf32>
    %326 = arith.addf %320, %325 : vector<1x128xf32>
    %c5_i32_107 = arith.constant 5 : i32
    %327 = arith.addi %298, %c5_i32_107 : i32
    %328 = arith.index_cast %327 : i32 to index
    %329 = memref.load %arg1[%328] : memref<96xi32, #tpu.memory_space<smem>>
    %330 = arith.index_cast %329 : i32 to index
    %c0_108 = arith.constant 0 : index
    %331 = vector.load %arg2[%330, %c0_108] : memref<512x128xf32, #tpu.memory_space<vmem>>, vector<1x128xf32>
    %332 = arith.addf %326, %331 : vector<1x128xf32>
    %c6_i32_109 = arith.constant 6 : i32
    %333 = arith.addi %298, %c6_i32_109 : i32
    %334 = arith.index_cast %333 : i32 to index
    %335 = memref.load %arg1[%334] : memref<96xi32, #tpu.memory_space<smem>>
    %336 = arith.index_cast %335 : i32 to index
    %c0_110 = arith.constant 0 : index
    %337 = vector.load %arg2[%336, %c0_110] : memref<512x128xf32, #tpu.memory_space<vmem>>, vector<1x128xf32>
    %338 = arith.addf %332, %337 : vector<1x128xf32>
    %c7_i32_111 = arith.constant 7 : i32
    %339 = arith.addi %298, %c7_i32_111 : i32
    %340 = arith.index_cast %339 : i32 to index
    %341 = memref.load %arg1[%340] : memref<96xi32, #tpu.memory_space<smem>>
    %342 = arith.index_cast %341 : i32 to index
    %c0_112 = arith.constant 0 : index
    %343 = vector.load %arg2[%342, %c0_112] : memref<512x128xf32, #tpu.memory_space<vmem>>, vector<1x128xf32>
    %344 = arith.addf %338, %343 : vector<1x128xf32>
    %c8_i32_113 = arith.constant 8 : i32
    %345 = arith.addi %298, %c8_i32_113 : i32
    %346 = arith.index_cast %345 : i32 to index
    %347 = memref.load %arg1[%346] : memref<96xi32, #tpu.memory_space<smem>>
    %348 = arith.index_cast %347 : i32 to index
    %c0_114 = arith.constant 0 : index
    %349 = vector.load %arg2[%348, %c0_114] : memref<512x128xf32, #tpu.memory_space<vmem>>, vector<1x128xf32>
    %350 = arith.addf %344, %349 : vector<1x128xf32>
    %c9_i32_115 = arith.constant 9 : i32
    %351 = arith.addi %298, %c9_i32_115 : i32
    %352 = arith.index_cast %351 : i32 to index
    %353 = memref.load %arg1[%352] : memref<96xi32, #tpu.memory_space<smem>>
    %354 = arith.index_cast %353 : i32 to index
    %c0_116 = arith.constant 0 : index
    %355 = vector.load %arg2[%354, %c0_116] : memref<512x128xf32, #tpu.memory_space<vmem>>, vector<1x128xf32>
    %356 = arith.addf %350, %355 : vector<1x128xf32>
    %c10_i32_117 = arith.constant 10 : i32
    %357 = arith.addi %298, %c10_i32_117 : i32
    %358 = arith.index_cast %357 : i32 to index
    %359 = memref.load %arg1[%358] : memref<96xi32, #tpu.memory_space<smem>>
    %360 = arith.index_cast %359 : i32 to index
    %c0_118 = arith.constant 0 : index
    %361 = vector.load %arg2[%360, %c0_118] : memref<512x128xf32, #tpu.memory_space<vmem>>, vector<1x128xf32>
    %362 = arith.addf %356, %361 : vector<1x128xf32>
    %c11_i32_119 = arith.constant 11 : i32
    %363 = arith.addi %298, %c11_i32_119 : i32
    %364 = arith.index_cast %363 : i32 to index
    %365 = memref.load %arg1[%364] : memref<96xi32, #tpu.memory_space<smem>>
    %366 = arith.index_cast %365 : i32 to index
    %c0_120 = arith.constant 0 : index
    %367 = vector.load %arg2[%366, %c0_120] : memref<512x128xf32, #tpu.memory_space<vmem>>, vector<1x128xf32>
    %368 = arith.addf %362, %367 : vector<1x128xf32>
    %c4 = arith.constant 4 : index
    %c0_121 = arith.constant 0 : index
    %369 = vector.load %arg6[%c4, %c0_121] : memref<8x128xf32, #tpu.memory_space<vmem>>, vector<1x128xf32>
    tpu.vector_store %arg6[%c4, %c0_121], %368 {strides = array<i32>} : memref<8x128xf32, #tpu.memory_space<vmem>>, vector<1x128xf32>,
    %c8_i32_122 = arith.constant 8 : i32
    %370 = arith.muli %arg0, %c8_i32_122 : i32
    %c5_i32_123 = arith.constant 5 : i32
    %371 = arith.addi %370, %c5_i32_123 : i32
    %c12_i32_124 = arith.constant 12 : i32
    %372 = arith.muli %371, %c12_i32_124 : i32
    %373 = arith.index_cast %372 : i32 to index
    %374 = memref.load %arg1[%373] : memref<96xi32, #tpu.memory_space<smem>>
    %375 = arith.index_cast %374 : i32 to index
    %c0_125 = arith.constant 0 : index
    %376 = vector.load %arg2[%375, %c0_125] : memref<512x128xf32, #tpu.memory_space<vmem>>, vector<1x128xf32>
    %c1_i32_126 = arith.constant 1 : i32
    %377 = arith.addi %372, %c1_i32_126 : i32
    %378 = arith.index_cast %377 : i32 to index
    %379 = memref.load %arg1[%378] : memref<96xi32, #tpu.memory_space<smem>>
    %380 = arith.index_cast %379 : i32 to index
    %c0_127 = arith.constant 0 : index
    %381 = vector.load %arg2[%380, %c0_127] : memref<512x128xf32, #tpu.memory_space<vmem>>, vector<1x128xf32>
    %382 = arith.addf %376, %381 : vector<1x128xf32>
    %c2_i32_128 = arith.constant 2 : i32
    %383 = arith.addi %372, %c2_i32_128 : i32
    %384 = arith.index_cast %383 : i32 to index
    %385 = memref.load %arg1[%384] : memref<96xi32, #tpu.memory_space<smem>>
    %386 = arith.index_cast %385 : i32 to index
    %c0_129 = arith.constant 0 : index
    %387 = vector.load %arg2[%386, %c0_129] : memref<512x128xf32, #tpu.memory_space<vmem>>, vector<1x128xf32>
    %388 = arith.addf %382, %387 : vector<1x128xf32>
    %c3_i32_130 = arith.constant 3 : i32
    %389 = arith.addi %372, %c3_i32_130 : i32
    %390 = arith.index_cast %389 : i32 to index
    %391 = memref.load %arg1[%390] : memref<96xi32, #tpu.memory_space<smem>>
    %392 = arith.index_cast %391 : i32 to index
    %c0_131 = arith.constant 0 : index
    %393 = vector.load %arg2[%392, %c0_131] : memref<512x128xf32, #tpu.memory_space<vmem>>, vector<1x128xf32>
    %394 = arith.addf %388, %393 : vector<1x128xf32>
    %c4_i32_132 = arith.constant 4 : i32
    %395 = arith.addi %372, %c4_i32_132 : i32
    %396 = arith.index_cast %395 : i32 to index
    %397 = memref.load %arg1[%396] : memref<96xi32, #tpu.memory_space<smem>>
    %398 = arith.index_cast %397 : i32 to index
    %c0_133 = arith.constant 0 : index
    %399 = vector.load %arg2[%398, %c0_133] : memref<512x128xf32, #tpu.memory_space<vmem>>, vector<1x128xf32>
    %400 = arith.addf %394, %399 : vector<1x128xf32>
    %c5_i32_134 = arith.constant 5 : i32
    %401 = arith.addi %372, %c5_i32_134 : i32
    %402 = arith.index_cast %401 : i32 to index
    %403 = memref.load %arg1[%402] : memref<96xi32, #tpu.memory_space<smem>>
    %404 = arith.index_cast %403 : i32 to index
    %c0_135 = arith.constant 0 : index
    %405 = vector.load %arg2[%404, %c0_135] : memref<512x128xf32, #tpu.memory_space<vmem>>, vector<1x128xf32>
    %406 = arith.addf %400, %405 : vector<1x128xf32>
    %c6_i32_136 = arith.constant 6 : i32
    %407 = arith.addi %372, %c6_i32_136 : i32
    %408 = arith.index_cast %407 : i32 to index
    %409 = memref.load %arg1[%408] : memref<96xi32, #tpu.memory_space<smem>>
    %410 = arith.index_cast %409 : i32 to index
    %c0_137 = arith.constant 0 : index
    %411 = vector.load %arg2[%410, %c0_137] : memref<512x128xf32, #tpu.memory_space<vmem>>, vector<1x128xf32>
    %412 = arith.addf %406, %411 : vector<1x128xf32>
    %c7_i32_138 = arith.constant 7 : i32
    %413 = arith.addi %372, %c7_i32_138 : i32
    %414 = arith.index_cast %413 : i32 to index
    %415 = memref.load %arg1[%414] : memref<96xi32, #tpu.memory_space<smem>>
    %416 = arith.index_cast %415 : i32 to index
    %c0_139 = arith.constant 0 : index
    %417 = vector.load %arg2[%416, %c0_139] : memref<512x128xf32, #tpu.memory_space<vmem>>, vector<1x128xf32>
    %418 = arith.addf %412, %417 : vector<1x128xf32>
    %c8_i32_140 = arith.constant 8 : i32
    %419 = arith.addi %372, %c8_i32_140 : i32
    %420 = arith.index_cast %419 : i32 to index
    %421 = memref.load %arg1[%420] : memref<96xi32, #tpu.memory_space<smem>>
    %422 = arith.index_cast %421 : i32 to index
    %c0_141 = arith.constant 0 : index
    %423 = vector.load %arg2[%422, %c0_141] : memref<512x128xf32, #tpu.memory_space<vmem>>, vector<1x128xf32>
    %424 = arith.addf %418, %423 : vector<1x128xf32>
    %c9_i32_142 = arith.constant 9 : i32
    %425 = arith.addi %372, %c9_i32_142 : i32
    %426 = arith.index_cast %425 : i32 to index
    %427 = memref.load %arg1[%426] : memref<96xi32, #tpu.memory_space<smem>>
    %428 = arith.index_cast %427 : i32 to index
    %c0_143 = arith.constant 0 : index
    %429 = vector.load %arg2[%428, %c0_143] : memref<512x128xf32, #tpu.memory_space<vmem>>, vector<1x128xf32>
    %430 = arith.addf %424, %429 : vector<1x128xf32>
    %c10_i32_144 = arith.constant 10 : i32
    %431 = arith.addi %372, %c10_i32_144 : i32
    %432 = arith.index_cast %431 : i32 to index
    %433 = memref.load %arg1[%432] : memref<96xi32, #tpu.memory_space<smem>>
    %434 = arith.index_cast %433 : i32 to index
    %c0_145 = arith.constant 0 : index
    %435 = vector.load %arg2[%434, %c0_145] : memref<512x128xf32, #tpu.memory_space<vmem>>, vector<1x128xf32>
    %436 = arith.addf %430, %435 : vector<1x128xf32>
    %c11_i32_146 = arith.constant 11 : i32
    %437 = arith.addi %372, %c11_i32_146 : i32
    %438 = arith.index_cast %437 : i32 to index
    %439 = memref.load %arg1[%438] : memref<96xi32, #tpu.memory_space<smem>>
    %440 = arith.index_cast %439 : i32 to index
    %c0_147 = arith.constant 0 : index
    %441 = vector.load %arg2[%440, %c0_147] : memref<512x128xf32, #tpu.memory_space<vmem>>, vector<1x128xf32>
    %442 = arith.addf %436, %441 : vector<1x128xf32>
    %c5 = arith.constant 5 : index
    %c0_148 = arith.constant 0 : index
    %443 = vector.load %arg6[%c5, %c0_148] : memref<8x128xf32, #tpu.memory_space<vmem>>, vector<1x128xf32>
    tpu.vector_store %arg6[%c5, %c0_148], %442 {strides = array<i32>} : memref<8x128xf32, #tpu.memory_space<vmem>>, vector<1x128xf32>,
    %c8_i32_149 = arith.constant 8 : i32
    %444 = arith.muli %arg0, %c8_i32_149 : i32
    %c6_i32_150 = arith.constant 6 : i32
    %445 = arith.addi %444, %c6_i32_150 : i32
    %c12_i32_151 = arith.constant 12 : i32
    %446 = arith.muli %445, %c12_i32_151 : i32
    %447 = arith.index_cast %446 : i32 to index
    %448 = memref.load %arg1[%447] : memref<96xi32, #tpu.memory_space<smem>>
    %449 = arith.index_cast %448 : i32 to index
    %c0_152 = arith.constant 0 : index
    %450 = vector.load %arg2[%449, %c0_152] : memref<512x128xf32, #tpu.memory_space<vmem>>, vector<1x128xf32>
    %c1_i32_153 = arith.constant 1 : i32
    %451 = arith.addi %446, %c1_i32_153 : i32
    %452 = arith.index_cast %451 : i32 to index
    %453 = memref.load %arg1[%452] : memref<96xi32, #tpu.memory_space<smem>>
    %454 = arith.index_cast %453 : i32 to index
    %c0_154 = arith.constant 0 : index
    %455 = vector.load %arg2[%454, %c0_154] : memref<512x128xf32, #tpu.memory_space<vmem>>, vector<1x128xf32>
    %456 = arith.addf %450, %455 : vector<1x128xf32>
    %c2_i32_155 = arith.constant 2 : i32
    %457 = arith.addi %446, %c2_i32_155 : i32
    %458 = arith.index_cast %457 : i32 to index
    %459 = memref.load %arg1[%458] : memref<96xi32, #tpu.memory_space<smem>>
    %460 = arith.index_cast %459 : i32 to index
    %c0_156 = arith.constant 0 : index
    %461 = vector.load %arg2[%460, %c0_156] : memref<512x128xf32, #tpu.memory_space<vmem>>, vector<1x128xf32>
    %462 = arith.addf %456, %461 : vector<1x128xf32>
    %c3_i32_157 = arith.constant 3 : i32
    %463 = arith.addi %446, %c3_i32_157 : i32
    %464 = arith.index_cast %463 : i32 to index
    %465 = memref.load %arg1[%464] : memref<96xi32, #tpu.memory_space<smem>>
    %466 = arith.index_cast %465 : i32 to index
    %c0_158 = arith.constant 0 : index
    %467 = vector.load %arg2[%466, %c0_158] : memref<512x128xf32, #tpu.memory_space<vmem>>, vector<1x128xf32>
    %468 = arith.addf %462, %467 : vector<1x128xf32>
    %c4_i32_159 = arith.constant 4 : i32
    %469 = arith.addi %446, %c4_i32_159 : i32
    %470 = arith.index_cast %469 : i32 to index
    %471 = memref.load %arg1[%470] : memref<96xi32, #tpu.memory_space<smem>>
    %472 = arith.index_cast %471 : i32 to index
    %c0_160 = arith.constant 0 : index
    %473 = vector.load %arg2[%472, %c0_160] : memref<512x128xf32, #tpu.memory_space<vmem>>, vector<1x128xf32>
    %474 = arith.addf %468, %473 : vector<1x128xf32>
    %c5_i32_161 = arith.constant 5 : i32
    %475 = arith.addi %446, %c5_i32_161 : i32
    %476 = arith.index_cast %475 : i32 to index
    %477 = memref.load %arg1[%476] : memref<96xi32, #tpu.memory_space<smem>>
    %478 = arith.index_cast %477 : i32 to index
    %c0_162 = arith.constant 0 : index
    %479 = vector.load %arg2[%478, %c0_162] : memref<512x128xf32, #tpu.memory_space<vmem>>, vector<1x128xf32>
    %480 = arith.addf %474, %479 : vector<1x128xf32>
    %c6_i32_163 = arith.constant 6 : i32
    %481 = arith.addi %446, %c6_i32_163 : i32
    %482 = arith.index_cast %481 : i32 to index
    %483 = memref.load %arg1[%482] : memref<96xi32, #tpu.memory_space<smem>>
    %484 = arith.index_cast %483 : i32 to index
    %c0_164 = arith.constant 0 : index
    %485 = vector.load %arg2[%484, %c0_164] : memref<512x128xf32, #tpu.memory_space<vmem>>, vector<1x128xf32>
    %486 = arith.addf %480, %485 : vector<1x128xf32>
    %c7_i32_165 = arith.constant 7 : i32
    %487 = arith.addi %446, %c7_i32_165 : i32
    %488 = arith.index_cast %487 : i32 to index
    %489 = memref.load %arg1[%488] : memref<96xi32, #tpu.memory_space<smem>>
    %490 = arith.index_cast %489 : i32 to index
    %c0_166 = arith.constant 0 : index
    %491 = vector.load %arg2[%490, %c0_166] : memref<512x128xf32, #tpu.memory_space<vmem>>, vector<1x128xf32>
    %492 = arith.addf %486, %491 : vector<1x128xf32>
    %c8_i32_167 = arith.constant 8 : i32
    %493 = arith.addi %446, %c8_i32_167 : i32
    %494 = arith.index_cast %493 : i32 to index
    %495 = memref.load %arg1[%494] : memref<96xi32, #tpu.memory_space<smem>>
    %496 = arith.index_cast %495 : i32 to index
    %c0_168 = arith.constant 0 : index
    %497 = vector.load %arg2[%496, %c0_168] : memref<512x128xf32, #tpu.memory_space<vmem>>, vector<1x128xf32>
    %498 = arith.addf %492, %497 : vector<1x128xf32>
    %c9_i32_169 = arith.constant 9 : i32
    %499 = arith.addi %446, %c9_i32_169 : i32
    %500 = arith.index_cast %499 : i32 to index
    %501 = memref.load %arg1[%500] : memref<96xi32, #tpu.memory_space<smem>>
    %502 = arith.index_cast %501 : i32 to index
    %c0_170 = arith.constant 0 : index
    %503 = vector.load %arg2[%502, %c0_170] : memref<512x128xf32, #tpu.memory_space<vmem>>, vector<1x128xf32>
    %504 = arith.addf %498, %503 : vector<1x128xf32>
    %c10_i32_171 = arith.constant 10 : i32
    %505 = arith.addi %446, %c10_i32_171 : i32
    %506 = arith.index_cast %505 : i32 to index
    %507 = memref.load %arg1[%506] : memref<96xi32, #tpu.memory_space<smem>>
    %508 = arith.index_cast %507 : i32 to index
    %c0_172 = arith.constant 0 : index
    %509 = vector.load %arg2[%508, %c0_172] : memref<512x128xf32, #tpu.memory_space<vmem>>, vector<1x128xf32>
    %510 = arith.addf %504, %509 : vector<1x128xf32>
    %c11_i32_173 = arith.constant 11 : i32
    %511 = arith.addi %446, %c11_i32_173 : i32
    %512 = arith.index_cast %511 : i32 to index
    %513 = memref.load %arg1[%512] : memref<96xi32, #tpu.memory_space<smem>>
    %514 = arith.index_cast %513 : i32 to index
    %c0_174 = arith.constant 0 : index
    %515 = vector.load %arg2[%514, %c0_174] : memref<512x128xf32, #tpu.memory_space<vmem>>, vector<1x128xf32>
    %516 = arith.addf %510, %515 : vector<1x128xf32>
    %c6 = arith.constant 6 : index
    %c0_175 = arith.constant 0 : index
    %517 = vector.load %arg6[%c6, %c0_175] : memref<8x128xf32, #tpu.memory_space<vmem>>, vector<1x128xf32>
    tpu.vector_store %arg6[%c6, %c0_175], %516 {strides = array<i32>} : memref<8x128xf32, #tpu.memory_space<vmem>>, vector<1x128xf32>,
    %c8_i32_176 = arith.constant 8 : i32
    %518 = arith.muli %arg0, %c8_i32_176 : i32
    %c7_i32_177 = arith.constant 7 : i32
    %519 = arith.addi %518, %c7_i32_177 : i32
    %c12_i32_178 = arith.constant 12 : i32
    %520 = arith.muli %519, %c12_i32_178 : i32
    %521 = arith.index_cast %520 : i32 to index
    %522 = memref.load %arg1[%521] : memref<96xi32, #tpu.memory_space<smem>>
    %523 = arith.index_cast %522 : i32 to index
    %c0_179 = arith.constant 0 : index
    %524 = vector.load %arg2[%523, %c0_179] : memref<512x128xf32, #tpu.memory_space<vmem>>, vector<1x128xf32>
    %c1_i32_180 = arith.constant 1 : i32
    %525 = arith.addi %520, %c1_i32_180 : i32
    %526 = arith.index_cast %525 : i32 to index
    %527 = memref.load %arg1[%526] : memref<96xi32, #tpu.memory_space<smem>>
    %528 = arith.index_cast %527 : i32 to index
    %c0_181 = arith.constant 0 : index
    %529 = vector.load %arg2[%528, %c0_181] : memref<512x128xf32, #tpu.memory_space<vmem>>, vector<1x128xf32>
    %530 = arith.addf %524, %529 : vector<1x128xf32>
    %c2_i32_182 = arith.constant 2 : i32
    %531 = arith.addi %520, %c2_i32_182 : i32
    %532 = arith.index_cast %531 : i32 to index
    %533 = memref.load %arg1[%532] : memref<96xi32, #tpu.memory_space<smem>>
    %534 = arith.index_cast %533 : i32 to index
    %c0_183 = arith.constant 0 : index
    %535 = vector.load %arg2[%534, %c0_183] : memref<512x128xf32, #tpu.memory_space<vmem>>, vector<1x128xf32>
    %536 = arith.addf %530, %535 : vector<1x128xf32>
    %c3_i32_184 = arith.constant 3 : i32
    %537 = arith.addi %520, %c3_i32_184 : i32
    %538 = arith.index_cast %537 : i32 to index
    %539 = memref.load %arg1[%538] : memref<96xi32, #tpu.memory_space<smem>>
    %540 = arith.index_cast %539 : i32 to index
    %c0_185 = arith.constant 0 : index
    %541 = vector.load %arg2[%540, %c0_185] : memref<512x128xf32, #tpu.memory_space<vmem>>, vector<1x128xf32>
    %542 = arith.addf %536, %541 : vector<1x128xf32>
    %c4_i32_186 = arith.constant 4 : i32
    %543 = arith.addi %520, %c4_i32_186 : i32
    %544 = arith.index_cast %543 : i32 to index
    %545 = memref.load %arg1[%544] : memref<96xi32, #tpu.memory_space<smem>>
    %546 = arith.index_cast %545 : i32 to index
    %c0_187 = arith.constant 0 : index
    %547 = vector.load %arg2[%546, %c0_187] : memref<512x128xf32, #tpu.memory_space<vmem>>, vector<1x128xf32>
    %548 = arith.addf %542, %547 : vector<1x128xf32>
    %c5_i32_188 = arith.constant 5 : i32
    %549 = arith.addi %520, %c5_i32_188 : i32
    %550 = arith.index_cast %549 : i32 to index
    %551 = memref.load %arg1[%550] : memref<96xi32, #tpu.memory_space<smem>>
    %552 = arith.index_cast %551 : i32 to index
    %c0_189 = arith.constant 0 : index
    %553 = vector.load %arg2[%552, %c0_189] : memref<512x128xf32, #tpu.memory_space<vmem>>, vector<1x128xf32>
    %554 = arith.addf %548, %553 : vector<1x128xf32>
    %c6_i32_190 = arith.constant 6 : i32
    %555 = arith.addi %520, %c6_i32_190 : i32
    %556 = arith.index_cast %555 : i32 to index
    %557 = memref.load %arg1[%556] : memref<96xi32, #tpu.memory_space<smem>>
    %558 = arith.index_cast %557 : i32 to index
    %c0_191 = arith.constant 0 : index
    %559 = vector.load %arg2[%558, %c0_191] : memref<512x128xf32, #tpu.memory_space<vmem>>, vector<1x128xf32>
    %560 = arith.addf %554, %559 : vector<1x128xf32>
    %c7_i32_192 = arith.constant 7 : i32
    %561 = arith.addi %520, %c7_i32_192 : i32
    %562 = arith.index_cast %561 : i32 to index
    %563 = memref.load %arg1[%562] : memref<96xi32, #tpu.memory_space<smem>>
    %564 = arith.index_cast %563 : i32 to index
    %c0_193 = arith.constant 0 : index
    %565 = vector.load %arg2[%564, %c0_193] : memref<512x128xf32, #tpu.memory_space<vmem>>, vector<1x128xf32>
    %566 = arith.addf %560, %565 : vector<1x128xf32>
    %c8_i32_194 = arith.constant 8 : i32
    %567 = arith.addi %520, %c8_i32_194 : i32
    %568 = arith.index_cast %567 : i32 to index
    %569 = memref.load %arg1[%568] : memref<96xi32, #tpu.memory_space<smem>>
    %570 = arith.index_cast %569 : i32 to index
    %c0_195 = arith.constant 0 : index
    %571 = vector.load %arg2[%570, %c0_195] : memref<512x128xf32, #tpu.memory_space<vmem>>, vector<1x128xf32>
    %572 = arith.addf %566, %571 : vector<1x128xf32>
    %c9_i32_196 = arith.constant 9 : i32
    %573 = arith.addi %520, %c9_i32_196 : i32
    %574 = arith.index_cast %573 : i32 to index
    %575 = memref.load %arg1[%574] : memref<96xi32, #tpu.memory_space<smem>>
    %576 = arith.index_cast %575 : i32 to index
    %c0_197 = arith.constant 0 : index
    %577 = vector.load %arg2[%576, %c0_197] : memref<512x128xf32, #tpu.memory_space<vmem>>, vector<1x128xf32>
    %578 = arith.addf %572, %577 : vector<1x128xf32>
    %c10_i32_198 = arith.constant 10 : i32
    %579 = arith.addi %520, %c10_i32_198 : i32
    %580 = arith.index_cast %579 : i32 to index
    %581 = memref.load %arg1[%580] : memref<96xi32, #tpu.memory_space<smem>>
    %582 = arith.index_cast %581 : i32 to index
    %c0_199 = arith.constant 0 : index
    %583 = vector.load %arg2[%582, %c0_199] : memref<512x128xf32, #tpu.memory_space<vmem>>, vector<1x128xf32>
    %584 = arith.addf %578, %583 : vector<1x128xf32>
    %c11_i32_200 = arith.constant 11 : i32
    %585 = arith.addi %520, %c11_i32_200 : i32
    %586 = arith.index_cast %585 : i32 to index
    %587 = memref.load %arg1[%586] : memref<96xi32, #tpu.memory_space<smem>>
    %588 = arith.index_cast %587 : i32 to index
    %c0_201 = arith.constant 0 : index
    %589 = vector.load %arg2[%588, %c0_201] : memref<512x128xf32, #tpu.memory_space<vmem>>, vector<1x128xf32>
    %590 = arith.addf %584, %589 : vector<1x128xf32>
    %c7 = arith.constant 7 : index
    %c0_202 = arith.constant 0 : index
    %591 = vector.load %arg6[%c7, %c0_202] : memref<8x128xf32, #tpu.memory_space<vmem>>, vector<1x128xf32>
    tpu.vector_store %arg6[%c7, %c0_202], %590 {strides = array<i32>} : memref<8x128xf32, #tpu.memory_space<vmem>>, vector<1x128xf32>,
    %c0_203 = arith.constant 0 : index
    %c0_204 = arith.constant 0 : index
    %592 = vector.load %arg6[%c0_203, %c0_204] : memref<8x128xf32, #tpu.memory_space<vmem>>, vector<8x128xf32>
    %c0_205 = arith.constant 0 : index
    %c0_206 = arith.constant 0 : index
    %593 = vector.load %arg3[%c0_205, %c0_206] : memref<128x128xf32, #tpu.memory_space<vmem>>, vector<128x128xf32>
    %cst = arith.constant dense<0.000000e+00> : vector<8x128xf32>
    %594 = tpu.matmul %592, %593, %cst {dimension_numbers = #tpu.dot_dimension_numbers<[1], [0], [0], [1], [0, 0, 1, 1], [], []>} : vector<8x128xf32>, vector<128x128xf32>, vector<8x128xf32> -> vector<8x128xf32>
    %c0_207 = arith.constant 0 : index
    %c0_208 = arith.constant 0 : index
    %595 = vector.load %arg4[%c0_207, %c0_208] : memref<1x128xf32, #tpu.memory_space<vmem>>, vector<1x128xf32>
    %596 = vector.broadcast %595 : vector<1x128xf32> to vector<8x128xf32>
    %597 = arith.addf %594, %596 : vector<8x128xf32>
    %c0_209 = arith.constant 0 : index
    %c0_210 = arith.constant 0 : index
    %598 = vector.load %arg5[%c0_209, %c0_210] : memref<8x128xf32, #tpu.memory_space<vmem>>, vector<8x128xf32>
    tpu.vector_store %arg5[%c0_209, %c0_210], %597 {strides = array<i32>} : memref<8x128xf32, #tpu.memory_space<vmem>>, vector<8x128xf32>,
    return
  }
  func.func @transform_0(%arg0: i32, %arg1: memref<96xi32, #tpu.memory_space<smem>>) -> (i32, i32) {
    %c0_i32 = arith.constant 0 : i32
    %c0_i32_0 = arith.constant 0 : i32
    %c0_i32_1 = arith.constant 0 : i32
    return %c0_i32, %c0_i32_0 : i32, i32
  }
  func.func @transform_1(%arg0: i32, %arg1: memref<96xi32, #tpu.memory_space<smem>>) -> (i32, i32) {
    %c0_i32 = arith.constant 0 : i32
    %c0_i32_0 = arith.constant 0 : i32
    %c0_i32_1 = arith.constant 0 : i32
    return %c0_i32, %c0_i32_0 : i32, i32
  }
  func.func @transform_2(%arg0: i32, %arg1: memref<96xi32, #tpu.memory_space<smem>>) -> (i32, i32) {
    %c0_i32 = arith.constant 0 : i32
    %c0_i32_0 = arith.constant 0 : i32
    %c0_i32_1 = arith.constant 0 : i32
    return %c0_i32, %c0_i32_0 : i32, i32
  }
  func.func @transform_3(%arg0: i32, %arg1: memref<96xi32, #tpu.memory_space<smem>>) -> (i32, i32) {
    %c0_i32 = arith.constant 0 : i32
    %c0_i32_0 = arith.constant 0 : i32
    return %arg0, %c0_i32 : i32, i32
  }
}

</mosaic_0001>

<bundles_post_ra>
// kernel: tpu_custom_call.1
= control target key start
LH: loop header
LB: loop body
LE: loop exit
PB: predicated region body
PF: predicated region fallthrough
CT: control target
= control target key end

     0   :  { %s1365_s0 = inlined_call_operand.hbm [shape: s32[96], index: 0, kind: input, shape index: {}]   ;;  %s1366_s1 = inlined_call_operand.hbm [shape: f32[512,128], index: 1, kind: input, shape index: {}]   ;;  %s1367_s2 = inlined_call_operand.hbm [shape: f32[128,128], index: 2, kind: input, shape index: {}]   ;;  %s1368_s3 = inlined_call_operand.hbm [shape: f32[1,128], index: 3, kind: input, shape index: {}]   ;;  %s1369_s4 = inlined_call_operand.hbm [shape: f32[8,128], index: 4, kind: output, shape index: {}]  }
   0x1   :  { %s936_s17 = scalar_lea.hbm %s1365_s0, 16 }
   0x2   :  { %p937_p0 = scmp.ne.s32.totalorder %s1365_s0, %s936_s17  ;;  %p940_p1 = scmp.lt.u32.totalorder %s936_s17, %s1365_s0 }
   0x4   :  { %p942_p2 = pnand %p940_p1, %p937_p0 }
   0x6   :  { %945 = shalt.err (!%p942_p2)  }
   0x7   :  { %s1042_s22 = smov [#allocation4]  }
   0x8   :  { %10 = dma.hbm_to_smem %s1365_s0, 16, %s1042_s22, [#allocation3] }
   0x9   :  { %1034 = dma.done.wait [#allocation3], 16 }
   0xa   :  { %1035 = vsyncadd [#allocation3], 4294967280 }
   0xb   :  { %12 = sfence }
   0xc   :  { %13 = vsyncpa [#allocation6], 0 }
   0xd   :  { %14 = vsyncpa [#allocation9], 0 }
   0xe   :  { %15 = vsyncpa [#allocation7], 0  ;;  %s1043_s25 = smov [#allocation8]   ;;  %s1044_s27 = smov [#allocation5]  }
   0xf   :  { %s33_s26 = sshll.u32 %s1043_s25, 4  ;;  %s21_s28 = sshll.u32 %s1044_s27, 4  ;;  %s34_s26 = int_to_ptr.vmem [resolvable:$true] %s33_s26  ;;  %s1089_s28 = int_to_ptr.vmem [resolvable:$true] %s21_s28 }
  0x10   :  { %s946_s5 = scalar_lea.hbm %s1367_s2, 2048 }
  0x11   :  { %p947_p3 = scmp.ne.s32.totalorder %s1367_s2, %s946_s5  ;;  %p950_p4 = scmp.lt.u32.totalorder %s946_s5, %s1367_s2 }
  0x13   :  { %p952_p5 = pnand %p950_p4, %p947_p3 }
  0x15   :  { %955 = shalt.err (!%p952_p5)
}
  0x16   :  { %s956_s9 = scalar_lea.vmem %s34_s26, 2048  ;;  %p961_p7 = scmp.lt.s32.totalorder %s34_s26, %s34_s26 }
  0x17   :  { %p957_p6 = scmp.ne.s32.totalorder %s34_s26, %s956_s9  ;;  %p962_p8 = scmp.lt.s32.totalorder %s956_s9, %s956_s9 }
  0x19   :  { %p963_p9 = por %p962_p8, %p961_p7 }
  0x1b   :  { %p964_p10 = pnand %p963_p9, %p957_p6 }
  0x1d   :  { %967 = shalt.err (!%p964_p10)
}
  0x1e   :  { %s1045_s10 = smov 128   ;;  %s1046_s11 = smov 8  }
  0x1f   :  { %39 = dma.hbm_to_vmem [thread:$0]  %s1367_s2, 2048, %s34_s26, [#allocation9], %s1045_s10, %s1045_s10, %s1046_s11  }
  0x20   :  { %s968_s16 = scalar_lea.hbm %s1366_s1, 8192 }
  0x21   :  { %p969_p11 = scmp.ne.s32.totalorder %s1366_s1, %s968_s16  ;;  %p972_p12 = scmp.lt.u32.totalorder %s968_s16, %s1366_s1 }
  0x23   :  { %p974_p13 = pnand %p972_p12, %p969_p11 }
  0x25   :  { %977 = shalt.err (!%p974_p13)
}
  0x26   :  { %s978_s21 = scalar_lea.vmem %s1089_s28, 8192  ;;  %p983_p1 = scmp.lt.s32.totalorder %s1089_s28, %s1089_s28 }
  0x27   :  { %p979_p0 = scmp.ne.s32.totalorder %s1089_s28, %s978_s21  ;;  %p984_p2 = scmp.lt.s32.totalorder %s978_s21, %s978_s21 }
  0x29   :  { %p985_p3 = por %p984_p2, %p983_p1 }
  0x2b   :  { %p986_p4 = pnand %p985_p3, %p979_p0 }
  0x2d   :  { %989 = shalt.err (!%p986_p4)
}
  0x2e   :  { %27 = dma.hbm_to_vmem [thread:$0]  %s1366_s1, 8192, %s1089_s28, [#allocation6], %s1045_s10, %s1045_s10, %s1046_s11  }
  0x2f   :  { %s1047_s23 = smov [#allocation10]   ;;  %s990_s27 = scalar_lea.hbm %s1368_s3, 16 }
  0x30   :  { %s46_s24 = sshll.u32 %s1047_s23, 4  ;;  %p991_p5 = scmp.ne.s32.totalorder %s1368_s3, %s990_s27  ;;  %s47_s24 = int_to_ptr.vmem [resolvable:$true] %s46_s24 }
  0x31   :  { %p994_p6 = scmp.lt.u32.totalorder %s990_s27, %s1368_s3 }
  0x33   :  { %p996_p7 = pnand %p994_p6, %p991_p5 }
  0x35   :  { %999 = shalt.err (!%p996_p7)
}
  0x36   :  { %s1000_s7 = scalar_lea.vmem %s47_s24, 16  ;;  %s1004_s1 = scalar_lea.vmem %s47_s24, 32 }
  0x37   :  { %p1001_p8 = scmp.ne.s32.totalorder %s47_s24, %s1000_s7  ;;  %p1005_p9 = scmp.lt.s32.totalorder %s47_s24, %s47_s24 }
  0x38   :  { %p1006_p10 = scmp.lt.s32.totalorder %s1004_s1, %s1000_s7 }
  0x3a   :  { %p1007_p11 = por %p1006_p10, %p1005_p9 }
  0x3c   :  { %p1008_p12 = pnand %p1007_p11, %p1001_p8 }
  0x3e   :  { %1011 = shalt.err (!%p1008_p12)
}
  0x3f   :  { %49 = dma.hbm_to_vmem [thread:$0]  %s1368_s3, 16, %s47_s24, [#allocation9]  }
  0x40   :  { %1036 = dma.done.wait [#allocation6], 8192  }
  0x41   :  { %1037 = vsyncadd [#allocation6], 4294959104 }
  0x42   :  { %1038 = dma.done.wait [#allocation9], 2064  }
  0x43   :  { %1039 = vsyncadd [#allocation9], 4294965232  ;;  %v1048_v0 = vmov 0.0|0.0   ;;  %vm1049_vm0 = vmmov 0   ;;  %v1050_v1 = vmov 0.0   ;;  %s60_s8 = sld [smem:[#allocation4]] }
  0x44   :  { %902 = vmatprep.subr.bf16.mxu0 %v1048_v0  ;;  %899 = vmatprep.mubr.msk.f32.mxu0 %vm1049_vm0, %v1050_v1  ;;  %s754_s9 = sld [smem:[#allocation4 + $0x1]]  ;;  %s755_s10 = sld [smem:[#allocation4 + $0x2]]  ;;  %v548_v2 = vld [vmem:[#allocation8] sm:$0xff]  ;;  %v549_v3 = vld [vmem:[#allocation8 + $0x8] sm:$0xff]  ;;  %v550_v4 = vld [vmem:[#allocation8 + $0x10] sm:$0xff] }
  0x45   :  { %s756_s11 = sld [smem:[#allocation4 + $0x3]]  ;;  %s1133_s12 = sld [smem:[#allocation4 + $0x4]]  ;;  %v903_v5 = vpack.c.bf16 %v549_v3, %v548_v2  ;;  %v551_v6 = vld [vmem:[#allocation8 + $0x18] sm:$0xff]  ;;  %v552_v8 = vld [vmem:[#allocation8 + $0x20] sm:$0xff]  ;;  %v553_v9 = vld [vmem:[#allocation8 + $0x28] sm:$0xff] }
  0x46   :  { %s1135_s13 = sld [smem:[#allocation4 + $0x5]]  ;;  %s1137_s3 = sld [smem:[#allocation4 + $0x6]]  ;;  %v906_v7 = vpack.c.bf16 %v551_v6, %v550_v4  ;;  %v909_v14 = vpack.c.bf16 %v553_v9, %v552_v8  ;;  %v554_v16 = vld [vmem:[#allocation8 + $0x30] sm:$0xff]  ;;  %v555_v17 = vld [vmem:[#allocation8 + $0x38] sm:$0xff]  ;;  %v556_v23 = vld [vmem:[#allocation8 + $0x40] sm:$0xff] }
  0x47   :  { %s1139_s14 = sld [smem:[#allocation4 + $0x7]]  ;;  %904 = vmatpush3.bf16.msra.mxu0 %v903_v5  ;;  %s1142_s15 = sld [smem:[#allocation4 + $0x8]]  ;;  %v912_v21 = vpack.c.bf16 %v555_v17, %v554_v16  ;;  %v557_v24 = vld [vmem:[#allocation8 + $0x48] sm:$0xff]  ;;  %v558_v27 = vld [vmem:[#allocation8 + $0x50] sm:$0xff]  ;;  %v559_v30 = vld [vmem:[#allocation8 + $0x58] sm:$0xff] }
  0x48   :  { %905 = vmatprep.subr.bf16.mxu0 %v1048_v0  ;;  %s1144_s19 = sld [smem:[#allocation4 + $0x9]]  ;;  %s1146_s21 = sld [smem:[#allocation4 + $0xa]]  ;;  %v915_v29 = vpack.c.bf16 %v557_v24, %v556_v23  ;;  %v918_v40 = vpack.c.bf16 %v559_v30, %v558_v27  ;;  %v560_v42 = vld [vmem:[#allocation8 + $0x60] sm:$0xff]  ;;  %v561_v43 = vld [vmem:[#allocation8 + $0x68] sm:$0xff]  ;;  %v562_v53 = vld [vmem:[#allocation8 + $0x70] sm:$0xff] }
  0x49   :  { %s61_s16 = scalar_lea.vmem [#allocation5], %s60_s8  ;;  %s1148_s2 = sld [smem:[#allocation4 + $0xb]]  ;;  %v921_v51 = vpack.c.bf16 %v561_v43, %v560_v42  ;;  %v563_v54 = vld [vmem:[#allocation8 + $0x78] sm:$0xff] }
  0x4a   :  { %v62_v10 = vld [vmem:[%s61_s16] sm:$0x1]  ;;  %s65_s17 = scalar_lea.vmem [#allocation5], %s754_s9  ;;  %s70_s18 = scalar_lea.vmem [#allocation5], %s755_s10  ;;  %v924_v60 = vpack.c.bf16 %v563_v54, %v562_v53 }
  0x4b   :  { %v66_v11 = vld [vmem:[%s65_s17] sm:$0x1]  ;;  %907 = vmatpush3.bf16.msra.mxu0 %v906_v7  ;;  %s75_s20 = scalar_lea.vmem [#allocation5], %s756_s11  ;;  %s80_s22 = scalar_lea.vmem [#allocation5], %s1133_s12 }
  0x4c   :  { %v67_v12 = vadd.f32 %v66_v11, %v62_v10  ;;  %v71_v13 = vld [vmem:[%s70_s18] sm:$0x1]  ;;  %908 = vmatprep.subr.bf16.mxu0 %v1048_v0  ;;  %s1152_s23 = sld [smem:[#allocation4 + $0xc]]  ;;  %s1154_s24 = sld [smem:[#allocation4 + $0xd]] }
  0x4d   :  { %v76_v15 = vld [vmem:[%s75_s20] sm:$0x1]  ;;  %s1156_s25 = sld [smem:[#allocation4 + $0xe]]  ;;  %s85_s26 = scalar_lea.vmem [#allocation5], %s1135_s13 }
  0x4e   :  { %v72_v18 = vadd.f32 %v71_v13, %v67_v12  ;;  %v81_v19 = vld [vmem:[%s80_s22] sm:$0x1]  ;;  %s1159_s27 = sld [smem:[#allocation4 + $0xf]]  ;;  %s1161_s29 = sld [smem:[#allocation4 + $0x10]] }
  0x4f   :  { %910 = vmatpush3.bf16.msra.mxu0 %v909_v14  ;;  %v86_v22 = vld [vmem:[%s85_s26] sm:$0x1]  ;;  %s1164_s30 = sld [smem:[#allocation4 + $0x11]]  ;;  %s90_s5 = scalar_lea.vmem [#allocation5], %s1137_s3 }
  0x50   :  { %v77_v20 = vadd.f32 %v76_v15, %v72_v18  ;;  %911 = vmatprep.subr.bf16.mxu0 %v1048_v0  ;;  %v91_v26 = vld [vmem:[%s90_s5] sm:$0x1]  ;;  %s1167_s6 = sld [smem:[#allocation4 + $0x12]]  ;;  %s1169_s7 = sld [smem:[#allocation4 + $0x13]] }
  0x51   :  { %s95_s1 = scalar_lea.vmem [#allocation5], %s1139_s14  ;;  %s1172_s28 = sld [smem:[#allocation4 + $0x14]] }
  0x52   :  { %v82_v25 = vadd.f32 %v81_v19, %v77_v20  ;;  %v96_v31 = vld [vmem:[%s95_s1] sm:$0x1]  ;;  %s100_s0 = scalar_lea.vmem [#allocation5], %s1142_s15  ;;  %s123_s8 = scalar_lea.vmem [#allocation5], %s1152_s23 }
  0x53   :  { %913 = vmatpush3.bf16.msra.mxu0 %v912_v21  ;;  %v101_v33 = vld [vmem:[%s100_s0] sm:$0x1]  ;;  %s127_s9 = scalar_lea.vmem [#allocation5], %s1154_s24  ;;  %s132_s10 = scalar_lea.vmem [#allocation5], %s1156_s25 }
  0x54   :  { %v87_v28 = vadd.f32 %v86_v22, %v82_v25  ;;  %914 = vmatprep.subr.bf16.mxu0 %v1048_v0  ;;  %v124_v34 = vld [vmem:[%s123_s8] sm:$0x1]  ;;  %s105_s11 = scalar_lea.vmem [#allocation5], %s1144_s19  ;;  %s1180_s12 = sld [smem:[#allocation4 + $0x15]] }
  0x55   :  { %v128_v35 = vld [vmem:[%s127_s9] sm:$0x1]  ;;  %s137_s13 = scalar_lea.vmem [#allocation5], %s1159_s27  ;;  %s1183_s3 = sld [smem:[#allocation4 + $0x16]] }
  0x56   :  { %v92_v32 = vadd.f32 %v91_v26, %v87_v28  ;;  %v133_v36 = vld [vmem:[%s132_s10] sm:$0x1]  ;;  %v129_v39 = vadd.f32 %v128_v35, %v124_v34  ;;  %s1186_s14 = sld [smem:[#allocation4 + $0x17]]  ;;  %s110_s15 = scalar_lea.vmem [#allocation5], %s1146_s21 }
  0x57   :  { %v106_v38 = vld [vmem:[%s105_s11] sm:$0x1]  ;;  %916 = vmatpush3.bf16.msra.mxu0 %v915_v29  ;;  %s142_s16 = scalar_lea.vmem [#allocation5], %s1161_s29  ;;  %s115_s17 = scalar_lea.vmem [#allocation5], %s1148_s2 }
  0x58   :  { %v97_v37 = vadd.f32 %v96_v31, %v92_v32  ;;  %v138_v41 = vld [vmem:[%s137_s13] sm:$0x1]  ;;  %917 = vmatprep.subr.bf16.mxu0 %v1048_v0  ;;  %v134_v45 = vadd.f32 %v133_v36, %v129_v39  ;;  %s1191_s18 = sld [smem:[#allocation4 + $0x18]]  ;;  %s1193_s19 = sld [smem:[#allocation4 + $0x19]] }
  0x59   :  { %v111_v46 = vld [vmem:[%s110_s15] sm:$0x1]  ;;  %s147_s20 = scalar_lea.vmem [#allocation5], %s1164_s30  ;;  %s1196_s22 = sld [smem:[#allocation4 + $0x1a]] }
  0x5a   :  { %v102_v44 = vadd.f32 %v101_v33, %v97_v37  ;;  %v143_v47 = vld [vmem:[%s142_s16] sm:$0x1]  ;;  %v139_v50 = vadd.f32 %v138_v41, %v134_v45  ;;  %s1198_s23 = sld [smem:[#allocation4 + $0x1b]]  ;;  %s1201_s21 = sld [smem:[#allocation4 + $0x1c]] }
  0x5b   :  { %v116_v49 = vld [vmem:[%s115_s17] sm:$0x1]  ;;  %919 = vmatpush3.bf16.msra.mxu0 %v918_v40  ;;  %s1203_s2 = sld [smem:[#allocation4 + $0x1d]]  ;;  %s152_s24 = scalar_lea.vmem [#allocation5], %s1167_s6 }
  0x5c   :  { %v107_v48 = vadd.f32 %v106_v38, %v102_v44  ;;  %v148_v52 = vld [vmem:[%s147_s20] sm:$0x1]  ;;  %920 = vmatprep.subr.bf16.mxu0 %v1048_v0  ;;  %v144_v56 = vadd.f32 %v143_v47, %v139_v50  ;;  %s1206_s25 = sld [smem:[#allocation4 + $0x1e]]  ;;  %s1208_s26 = sld [smem:[#allocation4 + $0x1f]] }
  0x5d   :  { %v153_v57 = vld [vmem:[%s152_s24] sm:$0x1]  ;;  %s157_s27 = scalar_lea.vmem [#allocation5], %s1169_s7  ;;  %s1211_s29 = sld [smem:[#allocation4 + $0x20]] }
  0x5e   :  { %v112_v55 = vadd.f32 %v111_v46, %v107_v48  ;;  %v149_v59 = vadd.f32 %v148_v52, %v144_v56  ;;  %v158_v61 = vld [vmem:[%s157_s27] sm:$0x1]  ;;  %s162_s30 = scalar_lea.vmem [#allocation5], %s1172_s28  ;;  %s184_s5 = scalar_lea.vmem [#allocation5], %s1191_s18 }
  0x5f   :  { %922 = vmatpush3.bf16.msra.mxu0 %v921_v51  ;;  %v163_v63 = vld [vmem:[%s162_s30] sm:$0x1]  ;;  %s188_s6 = scalar_lea.vmem [#allocation5], %s1193_s19  ;;  %s167_s1 = scalar_lea.vmem [#allocation5], %s1180_s12 }
  0x60   :  { %v117_v58 = vadd.f32 %v116_v49, %v112_v55  ;;  %923 = vmatprep.subr.bf16.mxu0 %v1048_v0  ;;  %v154_v62 = vadd.f32 %v153_v57, %v149_v59  ;;  %v185_v1 = vld [vmem:[%s184_s5] sm:$0x1]  ;;  %s193_s7 = scalar_lea.vmem [#allocation5], %s1196_s22  ;;  %s198_s0 = scalar_lea.vmem [#allocation5], %s1198_s23 }
  0x61   :  { %v189_v2 = vld [vmem:[%s188_s6] sm:$0x1]  ;;  %s1220_s8 = sld [smem:[#allocation4 + $0x21]]  ;;  %s172_s28 = scalar_lea.vmem [#allocation5], %s1183_s3 }
  0x62   :  { %118 = vst [vmem:[#allocation2] sm:$0x1] %v117_v58  ;;  %v159_v3 = vadd.f32 %v158_v61, %v154_v62  ;;  %v168_v4 = vld [vmem:[%s167_s1] sm:$0x1]  ;;  %v190_v5 = vadd.f32 %v189_v2, %v185_v1  ;;  %s1223_s9 = sld [smem:[#allocation4 + $0x22]]  ;;  %s203_s10 = scalar_lea.vmem [#allocation5], %s1201_s21 }
  0x63   :  { %v194_v6 = vld [vmem:[%s193_s7] sm:$0x1]  ;;  %925 = vmatpush3.bf16.msra.mxu0 %v924_v60  ;;  %s1226_s11 = sld [smem:[#allocation4 + $0x23]]  ;;  %s177_s12 = scalar_lea.vmem [#allocation5], %s1186_s14 }
  0x64   :  { %v199_v0 = vld [vmem:[%s198_s0] sm:$0x1]  ;;  %v164_v7 = vadd.f32 %v163_v63, %v159_v3  ;;  %v195_v9 = vadd.f32 %v194_v6, %v190_v5  ;;  %s789_s13 = sld [smem:[#allocation4 + $0x24]]  ;;  %s208_s15 = scalar_lea.vmem [#allocation5], %s1203_s2 }
  0x65   :  { %v173_v8 = vld [vmem:[%s172_s28] sm:$0x1]  ;;  %s790_s16 = sld [smem:[#allocation4 + $0x25]]  ;;  %s791_s17 = sld [smem:[#allocation4 + $0x26]] }
  0x66   :  { %v204_v10 = vld [vmem:[%s203_s10] sm:$0x1]  ;;  %v169_v11 = vadd.f32 %v168_v4, %v164_v7  ;;  %v200_v13 = vadd.f32 %v199_v0, %v195_v9  ;;  %s1230_s3 = sld [smem:[#allocation4 + $0x27]]  ;;  %s1232_s18 = sld [smem:[#allocation4 + $0x28]] }
  0x67   :  { %v178_v12 = vld [vmem:[%s177_s12] sm:$0x1]  ;;  %s213_s19 = scalar_lea.vmem [#allocation5], %s1206_s25  ;;  %s1235_s20 = sld [smem:[#allocation4 + $0x29]] }
  0x68   :  { %v209_v14 = vld [vmem:[%s208_s15] sm:$0x1]  ;;  %v174_v15 = vadd.f32 %v173_v8, %v169_v11  ;;  %v205_v16 = vadd.f32 %v204_v10, %v200_v13  ;;  %s1237_s14 = sld [smem:[#allocation4 + $0x2a]]  ;;  %s1239_s22 = sld [smem:[#allocation4 + $0x2b]] }
  0x69   :  { %v214_v17 = vld [vmem:[%s213_s19] sm:$0x1]  ;;  %s218_s23 = scalar_lea.vmem [#allocation5], %s1208_s26  ;;  %s1242_s21 = sld [smem:[#allocation4 + $0x2c]] }
  0x6a   :  { %v179_v18 = vadd.f32 %v178_v12, %v174_v15  ;;  %v210_v19 = vadd.f32 %v209_v14, %v205_v16  ;;  %v219_v20 = vld [vmem:[%s218_s23] sm:$0x1]  ;;  %s223_s2 = scalar_lea.vmem [#allocation5], %s1211_s29  ;;  %s245_s24 = scalar_lea.vmem [#allocation5], %s789_s13 }
  0x6b   :  { %v224_v22 = vld [vmem:[%s223_s2] sm:$0x1]  ;;  %s249_s25 = scalar_lea.vmem [#allocation5], %s790_s16  ;;  %s254_s27 = scalar_lea.vmem [#allocation5], %s791_s17 }
  0x6c   :  { %180 = vst [vmem:[#allocation2 + $0x1] sm:$0x1] %v179_v18  ;;  %v215_v21 = vadd.f32 %v214_v17, %v210_v19  ;;  %v246_v23 = vld [vmem:[%s245_s24] sm:$0x1]  ;;  %s228_s30 = scalar_lea.vmem [#allocation5], %s1220_s8  ;;  %s1246_s26 = sld [smem:[#allocation4 + $0x2d]] }
  0x6d   :  { %v250_v25 = vld [vmem:[%s249_s25] sm:$0x1]  ;;  %s259_s5 = scalar_lea.vmem [#allocation5], %s1230_s3  ;;  %s1249_s29 = sld [smem:[#allocation4 + $0x2e]] }
  0x6e   :  { %v220_v24 = vadd.f32 %v219_v20, %v215_v21  ;;  %v255_v26 = vld [vmem:[%s254_s27] sm:$0x1]  ;;  %v251_v28 = vadd.f32 %v250_v25, %v246_v23  ;;  %s233_s6 = scalar_lea.vmem [#allocation5], %s1223_s9  ;;  %s1252_s1 = sld [smem:[#allocation4 + $0x2f]] }
  0x6f   :  { %v229_v27 = vld [vmem:[%s228_s30] sm:$0x1]  ;;  %s264_s7 = scalar_lea.vmem [#allocation5], %s1232_s18  ;;  %s238_s0 = scalar_lea.vmem [#allocation5], %s1226_s11 }
  0x70   :  { %v225_v29 = vadd.f32 %v224_v22, %v220_v24  ;;  %v260_v30 = vld [vmem:[%s259_s5] sm:$0x1]  ;;  %v256_v32 = vadd.f32 %v255_v26, %v251_v28  ;;  %s801_s8 = sld [smem:[#allocation4 + $0x30]]  ;;  %s802_s28 = sld [smem:[#allocation4 + $0x31]] }
  0x71   :  { %v234_v31 = vld [vmem:[%s233_s6] sm:$0x1]  ;;  %s269_s10 = scalar_lea.vmem [#allocation5], %s1235_s20  ;;  %s803_s12 = sld [smem:[#allocation4 + $0x32]] }
  0x72   :  { %v230_v33 = vadd.f32 %v229_v27, %v225_v29  ;;  %v265_v34 = vld [vmem:[%s264_s7] sm:$0x1]  ;;  %v261_v36 = vadd.f32 %v260_v30, %v256_v32  ;;  %s804_s9 = sld [smem:[#allocation4 + $0x33]]  ;;  %s1257_s13 = sld [smem:[#allocation4 + $0x34]] }
  0x73   :  { %v239_v35 = vld [vmem:[%s238_s0] sm:$0x1]  ;;  %s1259_s15 = sld [smem:[#allocation4 + $0x35]]  ;;  %s274_s16 = scalar_lea.vmem [#allocation5], %s1237_s14 }
  0x74   :  { %v235_v37 = vadd.f32 %v234_v31, %v230_v33  ;;  %v270_v38 = vld [vmem:[%s269_s10] sm:$0x1]  ;;  %v266_v39 = vadd.f32 %v265_v34, %v261_v36  ;;  %s1262_s11 = sld [smem:[#allocation4 + $0x36]]  ;;  %s1264_s17 = sld [smem:[#allocation4 + $0x37]] }
  0x75   :  { %v275_v41 = vld [vmem:[%s274_s16] sm:$0x1]  ;;  %s279_s3 = scalar_lea.vmem [#allocation5], %s1239_s22  ;;  %s1267_s18 = sld [smem:[#allocation4 + $0x38]] }
  0x76   :  { %v240_v40 = vadd.f32 %v239_v35, %v235_v37  ;;  %v271_v42 = vadd.f32 %v270_v38, %v266_v39  ;;  %v280_v43 = vld [vmem:[%s279_s3] sm:$0x1]  ;;  %s284_s19 = scalar_lea.vmem [#allocation5], %s1242_s21  ;;  %s306_s20 = scalar_lea.vmem [#allocation5], %s801_s8 }
  0x77   :  { %v285_v45 = vld [vmem:[%s284_s19] sm:$0x1]  ;;  %s310_s23 = scalar_lea.vmem [#allocation5], %s802_s28  ;;  %s289_s14 = scalar_lea.vmem [#allocation5], %s1246_s26 }
  0x78   :  { %241 = vst [vmem:[#allocation2 + $0x2] sm:$0x1] %v240_v40  ;;  %v276_v44 = vadd.f32 %v275_v41, %v271_v42  ;;  %v307_v46 = vld [vmem:[%s306_s20] sm:$0x1]  ;;  %s315_s2 = scalar_lea.vmem [#allocation5], %s803_s12  ;;  %s320_s22 = scalar_lea.vmem [#allocation5], %s804_s9 }
  0x79   :  { %v311_v47 = vld [vmem:[%s310_s23] sm:$0x1]  ;;  %s1271_s24 = sld [smem:[#allocation4 + $0x39]]  ;;  %s294_s21 = scalar_lea.vmem [#allocation5], %s1249_s29 }
  0x7a   :  { %v281_v48 = vadd.f32 %v280_v43, %v276_v44  ;;  %v290_v49 = vld [vmem:[%s289_s14] sm:$0x1]  ;;  %v312_v50 = vadd.f32 %v311_v47, %v307_v46  ;;  %s1274_s25 = sld [smem:[#allocation4 + $0x3a]]  ;;  %s325_s27 = scalar_lea.vmem [#allocation5], %s1257_s13 }
  0x7b   :  { %v316_v51 = vld [vmem:[%s315_s2] sm:$0x1]  ;;  %s1277_s30 = sld [smem:[#allocation4 + $0x3b]]  ;;  %s299_s26 = scalar_lea.vmem [#allocation5], %s1252_s1 }
  0x7c   :  { %v321_v52 = vld [vmem:[%s320_s22] sm:$0x1]  ;;  %v286_v53 = vadd.f32 %v285_v45, %v281_v48  ;;  %v317_v55 = vadd.f32 %v316_v51, %v312_v50  ;;  %s813_s5 = sld [smem:[#allocation4 + $0x3c]]  ;;  %s330_s6 = scalar_lea.vmem [#allocation5], %s1259_s15 }
  0x7d   :  { %v295_v54 = vld [vmem:[%s294_s21] sm:$0x1]  ;;  %s814_s7 = sld [smem:[#allocation4 + $0x3d]]  ;;  %s815_s0 = sld [smem:[#allocation4 + $0x3e]] }
  0x7e   :  { %v326_v56 = vld [vmem:[%s325_s27] sm:$0x1]  ;;  %v291_v57 = vadd.f32 %v290_v49, %v286_v53  ;;  %v322_v59 = vadd.f32 %v321_v52, %v317_v55  ;;  %s1281_s29 = sld [smem:[#allocation4 + $0x3f]]  ;;  %s1283_s8 = sld [smem:[#allocation4 + $0x40]] }
  0x7f   :  { %v300_v58 = vld [vmem:[%s299_s26] sm:$0x1]  ;;  %s335_s28 = scalar_lea.vmem [#allocation5], %s1262_s11  ;;  %s1286_s10 = sld [smem:[#allocation4 + $0x41]] }
  0x80   :  { %v331_v60 = vld [vmem:[%s330_s6] sm:$0x1]  ;;  %v296_v61 = vadd.f32 %v295_v54, %v291_v57  ;;  %v327_v62 = vadd.f32 %v326_v56, %v322_v59  ;;  %s1288_s1 = sld [smem:[#allocation4 + $0x42]]  ;;  %s1290_s12 = sld [smem:[#allocation4 + $0x43]] }
  0x81   :  { %v336_v63 = vld [vmem:[%s335_s28] sm:$0x1]  ;;  %s340_s9 = scalar_lea.vmem [#allocation5], %s1264_s17  ;;  %s1293_s13 = sld [smem:[#allocation4 + $0x44]] }
  0x82   :  { %v301_v1 = vadd.f32 %v300_v58, %v296_v61  ;;  %v332_v2 = vadd.f32 %v331_v60, %v327_v62  ;;  %v341_v3 = vld [vmem:[%s340_s9] sm:$0x1]  ;;  %s345_s15 = scalar_lea.vmem [#allocation5], %s1267_s18  ;;  %s367_s16 = scalar_lea.vmem [#allocation5], %s813_s5 }
  0x83   :  { %v346_v5 = vld [vmem:[%s345_s15] sm:$0x1]  ;;  %s371_s11 = scalar_lea.vmem [#allocation5], %s814_s7  ;;  %s376_s3 = scalar_lea.vmem [#allocation5], %s815_s0 }
  0x84   :  { %302 = vst [vmem:[#allocation2 + $0x3] sm:$0x1] %v301_v1  ;;  %v337_v4 = vadd.f32 %v336_v63, %v332_v2  ;;  %v368_v6 = vld [vmem:[%s367_s16] sm:$0x1]  ;;  %s350_s19 = scalar_lea.vmem [#allocation5], %s1271_s24  ;;  %s1297_s17 = sld [smem:[#allocation4 + $0x45]] }
  0x85   :  { %v372_v7 = vld [vmem:[%s371_s11] sm:$0x1]  ;;  %s381_s20 = scalar_lea.vmem [#allocation5], %s1281_s29  ;;  %s1300_s18 = sld [smem:[#allocation4 + $0x46]] }
  0x86   :  { %v342_v0 = vadd.f32 %v341_v3, %v337_v4  ;;  %v377_v8 = vld [vmem:[%s376_s3] sm:$0x1]  ;;  %v373_v10 = vadd.f32 %v372_v7, %v368_v6  ;;  %s355_s23 = scalar_lea.vmem [#allocation5], %s1274_s25  ;;  %s1303_s14 = sld [smem:[#allocation4 + $0x47]] }
  0x87   :  { %v351_v9 = vld [vmem:[%s350_s19] sm:$0x1]  ;;  %s386_s2 = scalar_lea.vmem [#allocation5], %s1283_s8  ;;  %s360_s22 = scalar_lea.vmem [#allocation5], %s1277_s30 }
  0x88   :  { %v347_v11 = vadd.f32 %v346_v5, %v342_v0  ;;  %v382_v12 = vld [vmem:[%s381_s20] sm:$0x1]  ;;  %v378_v14 = vadd.f32 %v377_v8, %v373_v10  ;;  %s825_s24 = sld [smem:[#allocation4 + $0x48]]  ;;  %s826_s21 = sld [smem:[#allocation4 + $0x49]] }
  0x89   :  { %v356_v13 = vld [vmem:[%s355_s23] sm:$0x1]  ;;  %s391_s27 = scalar_lea.vmem [#allocation5], %s1286_s10  ;;  %s827_s26 = sld [smem:[#allocation4 + $0x4a]] }
  0x8a   :  { %v352_v15 = vadd.f32 %v351_v9, %v347_v11  ;;  %v387_v16 = vld [vmem:[%s386_s2] sm:$0x1]  ;;  %v383_v18 = vadd.f32 %v382_v12, %v378_v14  ;;  %s828_s25 = sld [smem:[#allocation4 + $0x4b]]  ;;  %s1308_s5 = sld [smem:[#allocation4 + $0x4c]] }
  0x8b   :  { %v361_v17 = vld [vmem:[%s360_s22] sm:$0x1]  ;;  %s1310_s6 = sld [smem:[#allocation4 + $0x4d]]  ;;  %s396_s7 = scalar_lea.vmem [#allocation5], %s1288_s1 }
  0x8c   :  { %v357_v19 = vadd.f32 %v356_v13, %v352_v15  ;;  %v392_v20 = vld [vmem:[%s391_s27] sm:$0x1]  ;;  %v388_v21 = vadd.f32 %v387_v16, %v383_v18  ;;  %s1313_s30 = sld [smem:[#allocation4 + $0x4e]]  ;;  %s1315_s0 = sld [smem:[#allocation4 + $0x4f]] }
  0x8d   :  { %v397_v23 = vld [vmem:[%s396_s7] sm:$0x1]  ;;  %s401_s29 = scalar_lea.vmem [#allocation5], %s1290_s12  ;;  %s406_s8 = scalar_lea.vmem [#allocation5], %s1293_s13 }
  0x8e   :  { %v362_v22 = vadd.f32 %v361_v17, %v357_v19  ;;  %v393_v24 = vadd.f32 %v392_v20, %v388_v21  ;;  %v402_v25 = vld [vmem:[%s401_s29] sm:$0x1]  ;;  %s411_s28 = scalar_lea.vmem [#allocation5], %s1297_s17  ;;  %s428_s10 = scalar_lea.vmem [#allocation5], %s825_s24  ;;  %v849_v19 = vld [vmem:[#allocation10] ss:$0 sm:$0xff] }
  0x8f   :  { %v407_v27 = vld [vmem:[%s406_s8] sm:$0x1]  ;;  %s432_s9 = scalar_lea.vmem [#allocation5], %s826_s21  ;;  %s437_s1 = scalar_lea.vmem [#allocation5], %s827_s26 }
  0x90   :  { %363 = vst [vmem:[#allocation2 + $0x4] sm:$0x1] %v362_v22  ;;  %v398_v26 = vadd.f32 %v397_v23, %v393_v24  ;;  %v412_v28 = vld [vmem:[%s411_s28] sm:$0x1]  ;;  %s1320_s15 = sld [smem:[#allocation4 + $0x50]]  ;;  %s442_s12 = scalar_lea.vmem [#allocation5], %s828_s25 }
  0x91   :  { %v429_v29 = vld [vmem:[%s428_s10] sm:$0x1]  ;;  %s1322_s13 = sld [smem:[#allocation4 + $0x51]]  ;;  %s416_s16 = scalar_lea.vmem [#allocation5], %s1300_s18 }
  0x92   :  { %v433_v30 = vld [vmem:[%s432_s9] sm:$0x1]  ;;  %v403_v31 = vadd.f32 %v402_v25, %v398_v26  ;;  %s1325_s11 = sld [smem:[#allocation4 + $0x52]]  ;;  %s447_s3 = scalar_lea.vmem [#allocation5], %s1308_s5 }
  0x93   :  { %v434_v32 = vadd.f32 %v433_v30, %v429_v29  ;;  %v438_v33 = vld [vmem:[%s437_s1] sm:$0x1]  ;;  %s1328_s19 = sld [smem:[#allocation4 + $0x53]]  ;;  %s421_s17 = scalar_lea.vmem [#allocation5], %s1303_s14 }
  0x94   :  { %v443_v34 = vld [vmem:[%s442_s12] sm:$0x1]  ;;  %v408_v35 = vadd.f32 %v407_v27, %v403_v31  ;;  %s837_s20 = sld [smem:[#allocation4 + $0x54]]  ;;  %s452_s23 = scalar_lea.vmem [#allocation5], %s1310_s6 }
  0x95   :  { %v417_v36 = vld [vmem:[%s416_s16] sm:$0x1]  ;;  %v439_v37 = vadd.f32 %v438_v33, %v434_v32  ;;  %s838_s2 = sld [smem:[#allocation4 + $0x55]]  ;;  %s839_s22 = sld [smem:[#allocation4 + $0x56]] }
  0x96   :  { %v448_v38 = vld [vmem:[%s447_s3] sm:$0x1]  ;;  %v413_v39 = vadd.f32 %v412_v28, %v408_v35  ;;  %s840_s18 = sld [smem:[#allocation4 + $0x57]]  ;;  %s1332_s24 = sld [smem:[#allocation4 + $0x58]] }
  0x97   :  { %v422_v40 = vld [vmem:[%s421_s17] sm:$0x1]  ;;  %v444_v41 = vadd.f32 %v443_v34, %v439_v37  ;;  %s457_s21 = scalar_lea.vmem [#allocation5], %s1313_s30  ;;  %s1335_s27 = sld [smem:[#allocation4 + $0x59]] }
  0x98   :  { %v453_v42 = vld [vmem:[%s452_s23] sm:$0x1]  ;;  %v418_v43 = vadd.f32 %v417_v36, %v413_v39  ;;  %s462_s14 = scalar_lea.vmem [#allocation5], %s1315_s0  ;;  %s1338_s26 = sld [smem:[#allocation4 + $0x5a]] }
  0x99   :  { %v449_v44 = vadd.f32 %v448_v38, %v444_v41  ;;  %v458_v45 = vld [vmem:[%s457_s21] sm:$0x1]  ;;  %s1340_s25 = sld [smem:[#allocation4 + $0x5b]]  ;;  %s467_s5 = scalar_lea.vmem [#allocation5], %s1320_s15 }
  0x9a   :  { %v423_v46 = vadd.f32 %v422_v40, %v418_v43  ;;  %v463_v48 = vld [vmem:[%s462_s14] sm:$0x1]  ;;  %s489_s6 = scalar_lea.vmem [#allocation5], %s837_s20  ;;  %s472_s0 = scalar_lea.vmem [#allocation5], %s1322_s13 }
  0x9b   :  { %v454_v47 = vadd.f32 %v453_v42, %v449_v44  ;;  %v468_v50 = vld [vmem:[%s467_s5] sm:$0x1]  ;;  %s493_s7 = scalar_lea.vmem [#allocation5], %s838_s2  ;;  %s498_s30 = scalar_lea.vmem [#allocation5], %s839_s22 }
  0x9c   :  { %424 = vst [vmem:[#allocation2 + $0x5] sm:$0x1] %v423_v46  ;;  %v490_v51 = vld [vmem:[%s489_s6] sm:$0x1]  ;;  %s1344_s29 = sld [smem:[#allocation4 + $0x5c]]  ;;  %s503_s8 = scalar_lea.vmem [#allocation5], %s840_s18 }
  0x9d   :  { %v459_v49 = vadd.f32 %v458_v45, %v454_v47  ;;  %v494_v53 = vld [vmem:[%s493_s7] sm:$0x1]  ;;  %s477_s28 = scalar_lea.vmem [#allocation5], %s1325_s11  ;;  %s846_s10 = sld [smem:[#allocation4 + $0x5d]] }
  0x9e   :  { %v499_v54 = vld [vmem:[%s498_s30] sm:$0x1]  ;;  %v495_v56 = vadd.f32 %v494_v53, %v490_v51  ;;  %s508_s9 = scalar_lea.vmem [#allocation5], %s1332_s24  ;;  %s482_s1 = scalar_lea.vmem [#allocation5], %s1328_s19 }
  0x9f   :  { %v464_v52 = vadd.f32 %v463_v48, %v459_v49  ;;  %v473_v55 = vld [vmem:[%s472_s0] sm:$0x1]  ;;  %s847_s15 = sld [smem:[#allocation4 + $0x5e]]  ;;  %s513_s12 = scalar_lea.vmem [#allocation5], %s1335_s27 }
  0xa0   :  { %v504_v58 = vld [vmem:[%s503_s8] sm:$0x1]  ;;  %v500_v60 = vadd.f32 %v499_v54, %v495_v56  ;;  %s848_s13 = sld [smem:[#allocation4 + $0x5f]]  ;;  %s518_s16 = scalar_lea.vmem [#allocation5], %s1338_s26 }
  0xa1   :  { %v469_v57 = vadd.f32 %v468_v50, %v464_v52  ;;  %v478_v59 = vld [vmem:[%s477_s28] sm:$0x1]  ;;  %s523_s11 = scalar_lea.vmem [#allocation5], %s1340_s25  ;;  %s1051_s23 = smov [#allocation11]  }
  0xa2   :  { %v509_v62 = vld [vmem:[%s508_s9] sm:$0x1]  ;;  %v505_v1 = vadd.f32 %v504_v58, %v500_v60  ;;  %s528_s3 = scalar_lea.vmem [#allocation5], %s1344_s29  ;;  %s648_s2 = sshll.u32 %s1051_s23, 4  ;;  %s649_s2 = int_to_ptr.vmem [resolvable:$true] %s648_s2 }
  0xa3   :  { %v474_v61 = vadd.f32 %v473_v55, %v469_v57  ;;  %v483_v63 = vld [vmem:[%s482_s1] sm:$0x1]  ;;  %s533_s19 = scalar_lea.vmem [#allocation5], %s846_s10  ;;  %s1012_s22 = scalar_lea.vmem %s649_s2, 128 }
  0xa4   :  { %v514_v3 = vld [vmem:[%s513_s12] sm:$0x1]  ;;  %v510_v4 = vadd.f32 %v509_v62, %v505_v1  ;;  %p1013_p13 = scmp.ne.s32.totalorder %s649_s2, %s1012_s22  ;;  %p1017_p0 = scmp.lt.s32.totalorder %s649_s2, %s649_s2 }
  0xa5   :  { %v479_v2 = vadd.f32 %v478_v59, %v474_v61  ;;  %v519_v6 = vld [vmem:[%s518_s16] sm:$0x1]  ;;  %s538_s17 = scalar_lea.vmem [#allocation5], %s847_s15  ;;  %p1018_p1 = scmp.lt.s32.totalorder %s1012_s22, %s1012_s22 }
  0xa6   :  { %v515_v0 = vadd.f32 %v514_v3, %v510_v4  ;;  %v524_v7 = vld [vmem:[%s523_s11] sm:$0x1]  ;;  %s543_s20 = scalar_lea.vmem [#allocation5], %s848_s13 }
  0xa7   :  { %v484_v5 = vadd.f32 %v483_v63, %v479_v2  ;;  %v529_v9 = vld [vmem:[%s528_s3] sm:$0x1]  ;;  %p1019_p2 = por %p1018_p1, %p1017_p0 }
  0xa8   :  { %v520_v8 = vadd.f32 %v519_v6, %v515_v0  ;;  %v534_v11 = vld [vmem:[%s533_s19] sm:$0x1] }
  0xa9   :  { %485 = vst [vmem:[#allocation2 + $0x6] sm:$0x1] %v484_v5  ;;  %v539_v13 = vld [vmem:[%s538_s17] sm:$0x1]  ;;  %p1020_p3 = pnand %p1019_p2, %p1013_p13 }
  0xaa   :  { %v525_v10 = vadd.f32 %v524_v7, %v520_v8  ;;  %v544_v15 = vld [vmem:[%s543_s20] sm:$0x1] }
  0xac   :  { %v530_v12 = vadd.f32 %v529_v9, %v525_v10 }
  0xae   :  { %v535_v14 = vadd.f32 %v534_v11, %v530_v12 }
  0xb0   :  { %v540_v16 = vadd.f32 %v539_v13, %v535_v14 }
  0xb2   :  { %v545_v17 = vadd.f32 %v544_v15, %v540_v16 }
  0xb4   :  { %546 = vst [vmem:[#allocation2 + $0x7] sm:$0x1] %v545_v17 }
  0xbb   :  { %v547_v18 = vld [vmem:[#allocation2] sm:$0xff] }
  0xbc   :  { %900 = vmatmul.mubr.f32.vlgmr.msra.gmra.mrb[0].mxu0 %v547_v18 }
 0x18f   :  { %v637_v20 = vpop.f32.mrb[0].mxu0 }
 0x190   :  { %v638_v21 = vadd.f32 %v849_v19, %v637_v20  ;;  %v901_v22 = vpop.f32.mrb[1].mxu0 }
 0x192   :  { %641 = vst [vmem:[#allocation11] sm:$0xff] %v638_v21 }
 0x193   :  { %1023 = shalt.err (!%p1020_p3)
}
 0x194   :  { %s1024_s21 = scalar_lea.hbm %s1369_s4, 128 }
 0x195   :  { %p1025_p4 = scmp.ne.s32.totalorder %s1369_s4, %s1024_s21  ;;  %p1028_p5 = scmp.lt.u32.totalorder %s1024_s21, %s1369_s4 }
 0x197   :  { %p1030_p6 = pnand %p1028_p5, %p1025_p4 }
 0x199   :  { %1033 = shalt.err (!%p1030_p6)
}
 0x19a   :  { %651 = dma.vmem_to_hbm [thread:$0]  %s649_s2, 128, %s1369_s4, [#allocation7]  }
 0x19b   :  { %1040 = dma.done.wait [#allocation7], 128  }
 0x19c   :  { %1041 = vsyncadd [#allocation7], 4294967168 }
 0x19d   :  { %655 = vsyncpa [#allocation6], 1 }
 0x19e   :  { %656 = vsyncpa [#allocation9], 1 }
 0x19f   :  { %657 = vsyncpa [#allocation7], 1 }

</bundles_post_ra>
